<compile_context>
chip_gen: v6e
topology: v6e:2x2x1
jax: 0.10.0
libtpu: 0.0.40
codegen_flags: <defaults>
</compile_context>

<pallas_src>
import math
import functools

import jax
import jax.numpy as jnp
from jax.experimental import pallas as pl
from jax.experimental.pallas import tpu as pltpu  # noqa: F401  (TPU-specific hooks)


# --------------------------------------------------------------------------
# helpers
# --------------------------------------------------------------------------
def _layer_norm(x, gamma, beta, eps=1e-5):
    mu = jnp.mean(x, axis=-1, keepdims=True)
    var = jnp.mean((x - mu) ** 2, axis=-1, keepdims=True)
    return (x - mu) * jax.lax.rsqrt(var + eps) * gamma + beta


# --------------------------------------------------------------------------
# Single fused kernel: embedding -> L encoder layers -> classifier
# Total VMEM footprint << 1 MiB at these sizes (fits on v5e/v6e/v7x).
# --------------------------------------------------------------------------
def fused_forward_kernel(inp_ref, pos_ref, w_emb_ref, b_emb_ref,
                         mq_ref, mk_ref,
                         wqkv_ref, bqkv_ref, wo_ref, bo_ref,
                         ln1g_ref, ln1b_ref,
                         w1_ref, b1_ref, w2_ref, b2_ref, ln2g_ref, ln2b_ref,
                         cw1_ref, cb1_ref, cg_ref, cb_ref, cw2_ref, cb2_ref,
                         out_ref, *, B, S, D, H, L):
    f32 = jnp.float32
    Dh = D // H
    BS = B * S
    scale = 1.0 / math.sqrt(Dh)

    # ------------- embedding: one dense matmul + bias + positions -----------
    x = jnp.dot(inp_ref[...], w_emb_ref[...], preferred_element_type=f32) + b_emb_ref[...]
    # positions broadcast along the leading batch dim inside the add (no copy)
    x = (x.reshape(B, S, D) + pos_ref[...][None]).reshape(BS, D)          # [BS, D]

    # --- additive attention bias, built ONCE from the [B,S] row mask --------
    # 1.0 == masked-out (query OR key position padded), as in the reference:
    #   attn_mask = attn_mask_r | attn_mask_c
    mcomb = jnp.maximum(mq_ref[...], mk_ref[...])                         # [B, S, S]
    bias = jnp.where(mcomb > 0.5, -1e9, 0.0)                              # [B, S, S]
    # TODO(synk): fully-masked query rows yield a uniform softmax here; the
    # reference behavior for all-padded rows is unspecified in the snippet.

    # ------------------ encoder layers (post-LN transformer) ----------------
    for l in range(L):
        # fused QKV: one [BS, D] @ [D, 3D] matmul (lane-dense weights)
        qkv = jnp.dot(x, wqkv_ref[l], preferred_element_type=f32) + bqkv_ref[l]
        q = qkv[:, :D].reshape(B, S, D)
        k = qkv[:, D:2 * D].reshape(B, S, D)
        v = qkv[:, 2 * D:].reshape(B, S, D)

        # per-head attention via static lane slices (heads = contiguous Dh cols)
        head_outs = []
        for h in range(H):
            sl = slice(h * Dh, (h + 1) * Dh)
            qh, kh, vh = q[:, :, sl], k[:, :, sl], v[:, :, sl]
            sc = jnp.einsum('bqd,bkd->bqk', qh, kh,
                            preferred_element_type=f32) * scale
            sc = sc + bias
            p = jax.nn.softmax(sc, axis=-1)
            head_outs.append(jnp.einsum('bqk,bkd->bqd', p, vh,
                                        preferred_element_type=f32))      # [B,S,Dh]
        o = jnp.concatenate(head_outs, axis=-1).reshape(BS, D)            # concat heads

        # single K=D output projection (lane-dense)
        attn = jnp.dot(o, wo_ref[l], preferred_element_type=f32) + bo_ref[l]

        h1 = _layer_norm(x + attn, ln1g_ref[l], ln1b_ref[l])

        ff = jnp.dot(h1, w1_ref[l], preferred_element_type=f32) + b1_ref[l]
        ff = jnp.maximum(ff, 0.0)
        ff = jnp.dot(ff, w2_ref[l], preferred_element_type=f32) + b2_ref[l]
        x = _layer_norm(h1 + ff, ln2g_ref[l], ln2b_ref[l])

    # ------------------------- classifier tail ------------------------------
    # mean over seq -> Linear -> BatchNorm1d (training-mode batch stats,
    # biased variance) -> Tanh -> Linear(D, 2)
    feat = jnp.mean(x.reshape(B, S, D), axis=1)                           # [B, D]
    hcl = jnp.dot(feat, cw1_ref[...], preferred_element_type=f32) + cb1_ref[...]
    mu = jnp.mean(hcl, axis=0, keepdims=True)
    var = jnp.mean((hcl - mu) ** 2, axis=0, keepdims=True)
    hcl = (hcl - mu) * jax.lax.rsqrt(var + 1e-5) * cg_ref[...] + cb_ref[...]
    hcl = jnp.tanh(hcl)
    out_ref[...] = jnp.dot(hcl, cw2_ref[...], preferred_element_type=f32) + cb2_ref[...]


# --------------------------------------------------------------------------
# Parameter packing (once, outside the kernel): fuse the 4 embedding weights
# into one padded [16, D] matrix, fuse per-layer Q/K/V into lane-dense
# [L, D, 3D] stacks, keep Wo as [L, D, D], stack everything along L.
# --------------------------------------------------------------------------
def pack_params(params, configs):
    D, C = configs.d_model, configs.enc_in
    emb, layers, cls = params["emb"], params["layers"], params["cls"]

    K = 3 * C + 1
    K_pad = ((K + 7) // 8) * 8
    w_emb = jnp.concatenate([emb["w_obs"], emb["w_msk"], emb["w_dlt"], emb["w_tim"]], axis=0)
    if K_pad > K:
        w_emb = jnp.concatenate([w_emb, jnp.zeros((K_pad - K, D), jnp.float32)], axis=0)

    return dict(
        w_emb=w_emb,                                              # [K_pad, D]
        b_emb=emb["b"],                                           # [1, D]
        pos=emb["pos"],                                           # [S, D]
        wqkv=jnp.stack([jnp.concatenate([lp["wq"], lp["wk"], lp["wv"]], axis=1)
                        for lp in layers]),                       # [L, D, 3D]
        bqkv=jnp.stack([jnp.concatenate([lp["bq"], lp["bk"], lp["bv"]], axis=1)
                        for lp in layers]),                       # [L, 1, 3D]
        wo=jnp.stack([lp["wo"] for lp in layers]),                # [L, D, D]
        bo=jnp.stack([lp["bo"] for lp in layers]),                # [L, 1, D]
        ln1_g=jnp.stack([lp["ln1_g"] for lp in layers]),
        ln1_b=jnp.stack([lp["ln1_b"] for lp in layers]),
        w1=jnp.stack([lp["w1"] for lp in layers]),                # [L, D, F]
        b1=jnp.stack([lp["b1"] for lp in layers]),                # [L, 1, F]
        w2=jnp.stack([lp["w2"] for lp in layers]),                # [L, F, D]
        b2=jnp.stack([lp["b2"] for lp in layers]),                # [L, 1, D]
        ln2_g=jnp.stack([lp["ln2_g"] for lp in layers]),
        ln2_b=jnp.stack([lp["ln2_b"] for lp in layers]),
        cls_w1=cls["w1"], cls_b1=cls["b1"],
        cls_g=cls["gamma"], cls_beta=cls["beta"],
        cls_w2=cls["w2"], cls_b2=cls["b2"],
    )


# --------------------------------------------------------------------------
# Model glue (mask construction exactly as in the PyTorch forward)
# --------------------------------------------------------------------------
def model_forward(packed, configs, observations, masks, times, deltas, attn_mask):
    B, S, C = observations.shape
    D, H, L = configs.d_model, configs.n_heads, configs.e_layers

    # TODO(synk): DNAEncoder's DNA_size / dna_mask path not in source; unused.

    # embedding driving input: concat(obs, masks, deltas, times), zero-padded
    # on the contraction dim to a multiple of 8 (matches padded w_emb rows).
    K = 3 * C + 1
    K_pad = packed["w_emb"].shape[0]
    pieces = [observations.reshape(B * S, C).astype(jnp.float32),
              masks.reshape(B * S, C).astype(jnp.float32),
              deltas.reshape(B * S, C).astype(jnp.float32),
              times.reshape(B * S, 1).astype(jnp.float32)]
    if K_pad > K:
        pieces.append(jnp.zeros((B * S, K_pad - K), jnp.float32))
    inp = jnp.concatenate(pieces, axis=-1)                        # [BS, K_pad]

    # only the O(B*S) row mask is shipped; the [S,S] OR-mask is built in-kernel
    m = attn_mask.astype(jnp.float32)          # [B, S], 1.0 == masked/padded
    mask_q = m[:, :, None]                     # [B, S, 1]
    mask_k = m[:, None, :]                     # [B, 1, S]

    kernel = functools.partial(fused_forward_kernel, B=B, S=S, D=D, H=H, L=L)
    return pl.pallas_call(
        kernel,
        out_shape=jax.ShapeDtypeStruct((B, 2), jnp.float32),
    )(inp, packed["pos"], packed["w_emb"], packed["b_emb"], mask_q, mask_k,
      packed["wqkv"], packed["bqkv"], packed["wo"], packed["bo"],
      packed["ln1_g"], packed["ln1_b"], packed["w1"], packed["b1"],
      packed["w2"], packed["b2"], packed["ln2_g"], packed["ln2_b"],
      packed["cls_w1"], packed["cls_b1"], packed["cls_g"], packed["cls_beta"],
      packed["cls_w2"], packed["cls_b2"])


# --------------------------------------------------------------------------
# Deterministic parameter init (same parameterization/semantics as before)
# --------------------------------------------------------------------------
def init_params(configs, key):
    C, D, F = configs.enc_in, configs.d_model, configs.d_ff
    L, S = configs.e_layers, configs.max_len
    keys = iter(jax.random.split(key, 8 + 10 * L + 8))

    def lin(fan_in, fan_out):
        scale = 1.0 / math.sqrt(fan_in)
        return jax.random.normal(next(keys), (fan_in, fan_out), jnp.float32) * scale

    # sinusoidal positional encoding [S, D]
    position = jnp.arange(S, dtype=jnp.float32)[:, None]
    div_term = jnp.exp(jnp.arange(0, D, 2, dtype=jnp.float32) * (-math.log(10000.0) / D))
    pe = jnp.zeros((S, D), jnp.float32)
    pe = pe.at[:, 0::2].set(jnp.sin(position * div_term))
    pe = pe.at[:, 1::2].set(jnp.cos(position * div_term))

    emb = dict(w_obs=lin(C, D), w_msk=lin(C, D), w_dlt=lin(C, D), w_tim=lin(1, D),
               b=jnp.zeros((1, D), jnp.float32), pos=pe)

    layers = []
    for _ in range(L):
        layers.append(dict(
            wq=lin(D, D), bq=jnp.zeros((1, D), jnp.float32),
            wk=lin(D, D), bk=jnp.zeros((1, D), jnp.float32),
            wv=lin(D, D), bv=jnp.zeros((1, D), jnp.float32),
            wo=lin(D, D), bo=jnp.zeros((1, D), jnp.float32),
            ln1_g=jnp.ones((1, D), jnp.float32), ln1_b=jnp.zeros((1, D), jnp.float32),
            w1=lin(D, F), b1=jnp.zeros((1, F), jnp.float32),
            w2=lin(F, D), b2=jnp.zeros((1, D), jnp.float32),
            ln2_g=jnp.ones((1, D), jnp.float32), ln2_b=jnp.zeros((1, D), jnp.float32),
        ))

    cls = dict(w1=lin(D, D), b1=jnp.zeros((1, D), jnp.float32),
               gamma=jnp.ones((1, D), jnp.float32), beta=jnp.zeros((1, D), jnp.float32),
               w2=lin(D, 2), b2=jnp.zeros((1, 2), jnp.float32))

    return dict(emb=emb, layers=layers, cls=cls)


class Config:
    enc_in = 4
    d_model = 32
    n_heads = 4
    d_ff = 64
    e_layers = 2
    max_len = 8
    DNA_size = 16   # TODO(synk): DNA_size semantics unavailable in provided source.


# --------------------------------------------------------------------------
if __name__ == "__main__":
    configs = Config()
    B, S, C = 2, configs.max_len, configs.enc_in

    key = jax.random.PRNGKey(0)
    k_obs, k_msk, k_tim, k_dlt, k_att = jax.random.split(key, 5)
    observations = jax.random.normal(k_obs, (B, S, C), jnp.float32)
    masks = (jax.random.uniform(k_msk, (B, S, C)) > 0.3).astype(jnp.float32)
    times = jnp.cumsum(jax.random.uniform(k_tim, (B, S), jnp.float32), axis=1)
    deltas = jax.random.uniform(k_dlt, (B, S, C), jnp.float32)
    attn_mask = jax.random.uniform(k_att, (B, S)) > 0.8   # bool, True = masked/padded

    params = init_params(configs, jax.random.PRNGKey(42))
    packed = pack_params(params, configs)   # one-time weight packing

    y = model_forward(packed, configs, observations, masks, times, deltas, attn_mask)
    y = jax.block_until_ready(y)
    assert y.shape == (B, 2) and y.dtype == jnp.float32
    print("KERNEL_OK")
</pallas_src>

<mosaic_0001>
module attributes {stable_mosaic.version = 11 : i64} {
  func.func @fused_forward_kernel(%arg0: memref<16x16xf32, #tpu.memory_space<vmem>>, %arg1: memref<8x32xf32, #tpu.memory_space<vmem>>, %arg2: memref<16x32xf32, #tpu.memory_space<vmem>>, %arg3: memref<1x32xf32, #tpu.memory_space<vmem>>, %arg4: memref<2x8x1xf32, #tpu.memory_space<vmem>>, %arg5: memref<2x1x8xf32, #tpu.memory_space<vmem>>, %arg6: memref<2x32x96xf32, #tpu.memory_space<vmem>>, %arg7: memref<2x1x96xf32, #tpu.memory_space<vmem>>, %arg8: memref<2x32x32xf32, #tpu.memory_space<vmem>>, %arg9: memref<2x1x32xf32, #tpu.memory_space<vmem>>, %arg10: memref<2x1x32xf32, #tpu.memory_space<vmem>>, %arg11: memref<2x1x32xf32, #tpu.memory_space<vmem>>, %arg12: memref<2x32x64xf32, #tpu.memory_space<vmem>>, %arg13: memref<2x1x64xf32, #tpu.memory_space<vmem>>, %arg14: memref<2x64x32xf32, #tpu.memory_space<vmem>>, %arg15: memref<2x1x32xf32, #tpu.memory_space<vmem>>, %arg16: memref<2x1x32xf32, #tpu.memory_space<vmem>>, %arg17: memref<2x1x32xf32, #tpu.memory_space<vmem>>, %arg18: memref<32x32xf32, #tpu.memory_space<vmem>>, %arg19: memref<1x32xf32, #tpu.memory_space<vmem>>, %arg20: memref<1x32xf32, #tpu.memory_space<vmem>>, %arg21: memref<1x32xf32, #tpu.memory_space<vmem>>, %arg22: memref<32x2xf32, #tpu.memory_space<vmem>>, %arg23: memref<1x2xf32, #tpu.memory_space<vmem>>, %arg24: memref<2x2xf32, #tpu.memory_space<vmem>>) attributes {dimension_semantics = [], scalar_prefetch = 0 : i64, scratch_operands = 0 : i64, tpu.core_type = #tpu.core_type<tc>} {
    %c0 = arith.constant 0 : index
    %c0_0 = arith.constant 0 : index
    %0 = vector.load %arg0[%c0, %c0_0] : memref<16x16xf32, #tpu.memory_space<vmem>>, vector<16x16xf32>
    %c0_1 = arith.constant 0 : index
    %c0_2 = arith.constant 0 : index
    %1 = vector.load %arg2[%c0_1, %c0_2] : memref<16x32xf32, #tpu.memory_space<vmem>>, vector<16x32xf32>
    %cst = arith.constant dense<0.000000e+00> : vector<16x32xf32>
    %2 = tpu.matmul %0, %1, %cst {dimension_numbers = #tpu.dot_dimension_numbers<[1], [0], [0], [1], [0, 0, 1, 1], [], []>} : vector<16x16xf32>, vector<16x32xf32>, vector<16x32xf32> -> vector<16x32xf32>
    %c0_3 = arith.constant 0 : index
    %c0_4 = arith.constant 0 : index
    %3 = vector.load %arg3[%c0_3, %c0_4] : memref<1x32xf32, #tpu.memory_space<vmem>>, vector<1x32xf32>
    %4 = vector.broadcast %3 : vector<1x32xf32> to vector<16x32xf32>
    %5 = arith.addf %2, %4 : vector<16x32xf32>
    %6 = vector.shape_cast %5 : vector<16x32xf32> to vector<2x8x32xf32>
    %c0_5 = arith.constant 0 : index
    %c0_6 = arith.constant 0 : index
    %7 = vector.load %arg1[%c0_5, %c0_6] : memref<8x32xf32, #tpu.memory_space<vmem>>, vector<8x32xf32>
    %8 = vector.shape_cast %7 : vector<8x32xf32> to vector<1x8x32xf32>
    %9 = vector.broadcast %8 : vector<1x8x32xf32> to vector<2x8x32xf32>
    %10 = arith.addf %6, %9 : vector<2x8x32xf32>
    %11 = vector.shape_cast %10 : vector<2x8x32xf32> to vector<16x32xf32>
    %c0_7 = arith.constant 0 : index
    %c0_8 = arith.constant 0 : index
    %c0_9 = arith.constant 0 : index
    %12 = vector.load %arg4[%c0_7, %c0_8, %c0_9] : memref<2x8x1xf32, #tpu.memory_space<vmem>>, vector<2x8x1xf32>
    %c0_10 = arith.constant 0 : index
    %c0_11 = arith.constant 0 : index
    %c0_12 = arith.constant 0 : index
    %13 = vector.load %arg5[%c0_10, %c0_11, %c0_12] : memref<2x1x8xf32, #tpu.memory_space<vmem>>, vector<2x1x8xf32>
    %14 = vector.broadcast %12 : vector<2x8x1xf32> to vector<2x8x8xf32>
    %15 = vector.broadcast %13 : vector<2x1x8xf32> to vector<2x8x8xf32>
    %16 = arith.maximumf %14, %15 : vector<2x8x8xf32>
    %cst_13 = arith.constant 5.000000e-01 : f32
    %17 = vector.broadcast %cst_13 : f32 to vector<2x8x8xf32>
    %18 = arith.cmpf ogt, %16, %17 : vector<2x8x8xf32>
    %cst_14 = arith.constant -1.000000e+09 : f32
    %cst_15 = arith.constant 0.000000e+00 : f32
    %19 = vector.broadcast %cst_14 : f32 to vector<2x8x8xf32>
    %20 = vector.broadcast %cst_15 : f32 to vector<2x8x8xf32>
    %21 = arith.select %18, %19, %20 : vector<2x8x8xi1>, vector<2x8x8xf32>
    %c0_16 = arith.constant 0 : index
    %c0_17 = arith.constant 0 : index
    %c0_18 = arith.constant 0 : index
    %22 = vector.load %arg6[%c0_16, %c0_17, %c0_18] : memref<2x32x96xf32, #tpu.memory_space<vmem>>, vector<1x32x96xf32>
    %23 = vector.shape_cast %22 : vector<1x32x96xf32> to vector<32x96xf32>
    %cst_19 = arith.constant dense<0.000000e+00> : vector<16x96xf32>
    %24 = tpu.matmul %11, %23, %cst_19 {dimension_numbers = #tpu.dot_dimension_numbers<[1], [0], [0], [1], [0, 0, 1, 1], [], []>} : vector<16x32xf32>, vector<32x96xf32>, vector<16x96xf32> -> vector<16x96xf32>
    %c0_20 = arith.constant 0 : index
    %c0_21 = arith.constant 0 : index
    %c0_22 = arith.constant 0 : index
    %25 = vector.load %arg7[%c0_20, %c0_21, %c0_22] : memref<2x1x96xf32, #tpu.memory_space<vmem>>, vector<1x1x96xf32>
    %26 = vector.shape_cast %25 : vector<1x1x96xf32> to vector<1x96xf32>
    %27 = vector.broadcast %26 : vector<1x96xf32> to vector<16x96xf32>
    %28 = arith.addf %24, %27 : vector<16x96xf32>
    %29 = vector.extract_strided_slice %28 {offsets = [0, 0], sizes = [16, 32], strides = [1, 1]} : vector<16x96xf32> to vector<16x32xf32>
    %30 = vector.shape_cast %29 : vector<16x32xf32> to vector<2x8x32xf32>
    %31 = vector.extract_strided_slice %28 {offsets = [0, 32], sizes = [16, 32], strides = [1, 1]} : vector<16x96xf32> to vector<16x32xf32>
    %32 = vector.shape_cast %31 : vector<16x32xf32> to vector<2x8x32xf32>
    %33 = vector.extract_strided_slice %28 {offsets = [0, 64], sizes = [16, 32], strides = [1, 1]} : vector<16x96xf32> to vector<16x32xf32>
    %34 = vector.shape_cast %33 : vector<16x32xf32> to vector<2x8x32xf32>
    %35 = vector.extract_strided_slice %30 {offsets = [0, 0, 0], sizes = [2, 8, 8], strides = [1, 1, 1]} : vector<2x8x32xf32> to vector<2x8x8xf32>
    %36 = vector.extract_strided_slice %32 {offsets = [0, 0, 0], sizes = [2, 8, 8], strides = [1, 1, 1]} : vector<2x8x32xf32> to vector<2x8x8xf32>
    %37 = vector.extract_strided_slice %34 {offsets = [0, 0, 0], sizes = [2, 8, 8], strides = [1, 1, 1]} : vector<2x8x32xf32> to vector<2x8x8xf32>
    "tpu.trace_start"() <{level = 10 : i32, message = "bqd,bkd->bqk"}> : () -> ()
    %cst_23 = arith.constant dense<0.000000e+00> : vector<2x8x8xf32>
    %38 = tpu.matmul %35, %36, %cst_23 {dimension_numbers = #tpu.dot_dimension_numbers<[2], [2], [1], [1], [0, 0, 0, 1, 1, 1], [0], [0]>} : vector<2x8x8xf32>, vector<2x8x8xf32>, vector<2x8x8xf32> -> vector<2x8x8xf32>
    "tpu.trace_stop"() : () -> ()
    %cst_24 = arith.constant 0.353553385 : f32
    %39 = vector.broadcast %cst_24 : f32 to vector<2x8x8xf32>
    %40 = arith.mulf %38, %39 : vector<2x8x8xf32>
    %41 = arith.addf %40, %21 : vector<2x8x8xf32>
    %cst_25 = arith.constant dense<0xFF800000> : vector<2x8xf32>
    %42 = vector.multi_reduction <maximumf>, %41, %cst_25 [2] : vector<2x8x8xf32> to vector<2x8xf32>
    %cst_26 = arith.constant 0xFF800000 : f32
    %43 = vector.broadcast %cst_26 : f32 to vector<2x8xf32>
    %44 = arith.maximumf %43, %42 : vector<2x8xf32>
    %45 = vector.shape_cast %44 : vector<2x8xf32> to vector<2x8x1xf32>
    %46 = vector.broadcast %45 : vector<2x8x1xf32> to vector<2x8x8xf32>
    %47 = arith.subf %41, %46 : vector<2x8x8xf32>
    %48 = math.exp %47 : vector<2x8x8xf32>
    %cst_27 = arith.constant dense<0.000000e+00> : vector<2x8xf32>
    %49 = vector.multi_reduction <add>, %48, %cst_27 [2] : vector<2x8x8xf32> to vector<2x8xf32>
    %50 = vector.shape_cast %49 : vector<2x8xf32> to vector<2x8x1xf32>
    %51 = vector.broadcast %50 : vector<2x8x1xf32> to vector<2x8x8xf32>
    %52 = arith.divf %48, %51 : vector<2x8x8xf32>
    "tpu.trace_start"() <{level = 10 : i32, message = "bqk,bkd->bqd"}> : () -> ()
    %cst_28 = arith.constant dense<0.000000e+00> : vector<2x8x8xf32>
    %53 = tpu.matmul %52, %37, %cst_28 {dimension_numbers = #tpu.dot_dimension_numbers<[2], [1], [1], [2], [0, 0, 0, 1, 1, 2], [0], [0]>} : vector<2x8x8xf32>, vector<2x8x8xf32>, vector<2x8x8xf32> -> vector<2x8x8xf32>
    "tpu.trace_stop"() : () -> ()
    %54 = vector.extract_strided_slice %30 {offsets = [0, 0, 8], sizes = [2, 8, 8], strides = [1, 1, 1]} : vector<2x8x32xf32> to vector<2x8x8xf32>
    %55 = vector.extract_strided_slice %32 {offsets = [0, 0, 8], sizes = [2, 8, 8], strides = [1, 1, 1]} : vector<2x8x32xf32> to vector<2x8x8xf32>
    %56 = vector.extract_strided_slice %34 {offsets = [0, 0, 8], sizes = [2, 8, 8], strides = [1, 1, 1]} : vector<2x8x32xf32> to vector<2x8x8xf32>
    "tpu.trace_start"() <{level = 10 : i32, message = "bqd,bkd->bqk"}> : () -> ()
    %cst_29 = arith.constant dense<0.000000e+00> : vector<2x8x8xf32>
    %57 = tpu.matmul %54, %55, %cst_29 {dimension_numbers = #tpu.dot_dimension_numbers<[2], [2], [1], [1], [0, 0, 0, 1, 1, 1], [0], [0]>} : vector<2x8x8xf32>, vector<2x8x8xf32>, vector<2x8x8xf32> -> vector<2x8x8xf32>
    "tpu.trace_stop"() : () -> ()
    %cst_30 = arith.constant 0.353553385 : f32
    %58 = vector.broadcast %cst_30 : f32 to vector<2x8x8xf32>
    %59 = arith.mulf %57, %58 : vector<2x8x8xf32>
    %60 = arith.addf %59, %21 : vector<2x8x8xf32>
    %cst_31 = arith.constant dense<0xFF800000> : vector<2x8xf32>
    %61 = vector.multi_reduction <maximumf>, %60, %cst_31 [2] : vector<2x8x8xf32> to vector<2x8xf32>
    %cst_32 = arith.constant 0xFF800000 : f32
    %62 = vector.broadcast %cst_32 : f32 to vector<2x8xf32>
    %63 = arith.maximumf %62, %61 : vector<2x8xf32>
    %64 = vector.shape_cast %63 : vector<2x8xf32> to vector<2x8x1xf32>
    %65 = vector.broadcast %64 : vector<2x8x1xf32> to vector<2x8x8xf32>
    %66 = arith.subf %60, %65 : vector<2x8x8xf32>
    %67 = math.exp %66 : vector<2x8x8xf32>
    %cst_33 = arith.constant dense<0.000000e+00> : vector<2x8xf32>
    %68 = vector.multi_reduction <add>, %67, %cst_33 [2] : vector<2x8x8xf32> to vector<2x8xf32>
    %69 = vector.shape_cast %68 : vector<2x8xf32> to vector<2x8x1xf32>
    %70 = vector.broadcast %69 : vector<2x8x1xf32> to vector<2x8x8xf32>
    %71 = arith.divf %67, %70 : vector<2x8x8xf32>
    "tpu.trace_start"() <{level = 10 : i32, message = "bqk,bkd->bqd"}> : () -> ()
    %cst_34 = arith.constant dense<0.000000e+00> : vector<2x8x8xf32>
    %72 = tpu.matmul %71, %56, %cst_34 {dimension_numbers = #tpu.dot_dimension_numbers<[2], [1], [1], [2], [0, 0, 0, 1, 1, 2], [0], [0]>} : vector<2x8x8xf32>, vector<2x8x8xf32>, vector<2x8x8xf32> -> vector<2x8x8xf32>
    "tpu.trace_stop"() : () -> ()
    %73 = vector.extract_strided_slice %30 {offsets = [0, 0, 16], sizes = [2, 8, 8], strides = [1, 1, 1]} : vector<2x8x32xf32> to vector<2x8x8xf32>
    %74 = vector.extract_strided_slice %32 {offsets = [0, 0, 16], sizes = [2, 8, 8], strides = [1, 1, 1]} : vector<2x8x32xf32> to vector<2x8x8xf32>
    %75 = vector.extract_strided_slice %34 {offsets = [0, 0, 16], sizes = [2, 8, 8], strides = [1, 1, 1]} : vector<2x8x32xf32> to vector<2x8x8xf32>
    "tpu.trace_start"() <{level = 10 : i32, message = "bqd,bkd->bqk"}> : () -> ()
    %cst_35 = arith.constant dense<0.000000e+00> : vector<2x8x8xf32>
    %76 = tpu.matmul %73, %74, %cst_35 {dimension_numbers = #tpu.dot_dimension_numbers<[2], [2], [1], [1], [0, 0, 0, 1, 1, 1], [0], [0]>} : vector<2x8x8xf32>, vector<2x8x8xf32>, vector<2x8x8xf32> -> vector<2x8x8xf32>
    "tpu.trace_stop"() : () -> ()
    %cst_36 = arith.constant 0.353553385 : f32
    %77 = vector.broadcast %cst_36 : f32 to vector<2x8x8xf32>
    %78 = arith.mulf %76, %77 : vector<2x8x8xf32>
    %79 = arith.addf %78, %21 : vector<2x8x8xf32>
    %cst_37 = arith.constant dense<0xFF800000> : vector<2x8xf32>
    %80 = vector.multi_reduction <maximumf>, %79, %cst_37 [2] : vector<2x8x8xf32> to vector<2x8xf32>
    %cst_38 = arith.constant 0xFF800000 : f32
    %81 = vector.broadcast %cst_38 : f32 to vector<2x8xf32>
    %82 = arith.maximumf %81, %80 : vector<2x8xf32>
    %83 = vector.shape_cast %82 : vector<2x8xf32> to vector<2x8x1xf32>
    %84 = vector.broadcast %83 : vector<2x8x1xf32> to vector<2x8x8xf32>
    %85 = arith.subf %79, %84 : vector<2x8x8xf32>
    %86 = math.exp %85 : vector<2x8x8xf32>
    %cst_39 = arith.constant dense<0.000000e+00> : vector<2x8xf32>
    %87 = vector.multi_reduction <add>, %86, %cst_39 [2] : vector<2x8x8xf32> to vector<2x8xf32>
    %88 = vector.shape_cast %87 : vector<2x8xf32> to vector<2x8x1xf32>
    %89 = vector.broadcast %88 : vector<2x8x1xf32> to vector<2x8x8xf32>
    %90 = arith.divf %86, %89 : vector<2x8x8xf32>
    "tpu.trace_start"() <{level = 10 : i32, message = "bqk,bkd->bqd"}> : () -> ()
    %cst_40 = arith.constant dense<0.000000e+00> : vector<2x8x8xf32>
    %91 = tpu.matmul %90, %75, %cst_40 {dimension_numbers = #tpu.dot_dimension_numbers<[2], [1], [1], [2], [0, 0, 0, 1, 1, 2], [0], [0]>} : vector<2x8x8xf32>, vector<2x8x8xf32>, vector<2x8x8xf32> -> vector<2x8x8xf32>
    "tpu.trace_stop"() : () -> ()
    %92 = vector.extract_strided_slice %30 {offsets = [0, 0, 24], sizes = [2, 8, 8], strides = [1, 1, 1]} : vector<2x8x32xf32> to vector<2x8x8xf32>
    %93 = vector.extract_strided_slice %32 {offsets = [0, 0, 24], sizes = [2, 8, 8], strides = [1, 1, 1]} : vector<2x8x32xf32> to vector<2x8x8xf32>
    %94 = vector.extract_strided_slice %34 {offsets = [0, 0, 24], sizes = [2, 8, 8], strides = [1, 1, 1]} : vector<2x8x32xf32> to vector<2x8x8xf32>
    "tpu.trace_start"() <{level = 10 : i32, message = "bqd,bkd->bqk"}> : () -> ()
    %cst_41 = arith.constant dense<0.000000e+00> : vector<2x8x8xf32>
    %95 = tpu.matmul %92, %93, %cst_41 {dimension_numbers = #tpu.dot_dimension_numbers<[2], [2], [1], [1], [0, 0, 0, 1, 1, 1], [0], [0]>} : vector<2x8x8xf32>, vector<2x8x8xf32>, vector<2x8x8xf32> -> vector<2x8x8xf32>
    "tpu.trace_stop"() : () -> ()
    %cst_42 = arith.constant 0.353553385 : f32
    %96 = vector.broadcast %cst_42 : f32 to vector<2x8x8xf32>
    %97 = arith.mulf %95, %96 : vector<2x8x8xf32>
    %98 = arith.addf %97, %21 : vector<2x8x8xf32>
    %cst_43 = arith.constant dense<0xFF800000> : vector<2x8xf32>
    %99 = vector.multi_reduction <maximumf>, %98, %cst_43 [2] : vector<2x8x8xf32> to vector<2x8xf32>
    %cst_44 = arith.constant 0xFF800000 : f32
    %100 = vector.broadcast %cst_44 : f32 to vector<2x8xf32>
    %101 = arith.maximumf %100, %99 : vector<2x8xf32>
    %102 = vector.shape_cast %101 : vector<2x8xf32> to vector<2x8x1xf32>
    %103 = vector.broadcast %102 : vector<2x8x1xf32> to vector<2x8x8xf32>
    %104 = arith.subf %98, %103 : vector<2x8x8xf32>
    %105 = math.exp %104 : vector<2x8x8xf32>
    %cst_45 = arith.constant dense<0.000000e+00> : vector<2x8xf32>
    %106 = vector.multi_reduction <add>, %105, %cst_45 [2] : vector<2x8x8xf32> to vector<2x8xf32>
    %107 = vector.shape_cast %106 : vector<2x8xf32> to vector<2x8x1xf32>
    %108 = vector.broadcast %107 : vector<2x8x1xf32> to vector<2x8x8xf32>
    %109 = arith.divf %105, %108 : vector<2x8x8xf32>
    "tpu.trace_start"() <{level = 10 : i32, message = "bqk,bkd->bqd"}> : () -> ()
    %cst_46 = arith.constant dense<0.000000e+00> : vector<2x8x8xf32>
    %110 = tpu.matmul %109, %94, %cst_46 {dimension_numbers = #tpu.dot_dimension_numbers<[2], [1], [1], [2], [0, 0, 0, 1, 1, 2], [0], [0]>} : vector<2x8x8xf32>, vector<2x8x8xf32>, vector<2x8x8xf32> -> vector<2x8x8xf32>
    "tpu.trace_stop"() : () -> ()
    %111 = tpu.concatenate %53, %72, %91, %110 in 2 : vector<2x8x8xf32>, vector<2x8x8xf32>, vector<2x8x8xf32>, vector<2x8x8xf32> -> vector<2x8x32xf32>
    %112 = vector.shape_cast %111 : vector<2x8x32xf32> to vector<16x32xf32>
    %c0_47 = arith.constant 0 : index
    %c0_48 = arith.constant 0 : index
    %c0_49 = arith.constant 0 : index
    %113 = vector.load %arg8[%c0_47, %c0_48, %c0_49] : memref<2x32x32xf32, #tpu.memory_space<vmem>>, vector<1x32x32xf32>
    %114 = vector.shape_cast %113 : vector<1x32x32xf32> to vector<32x32xf32>
    %cst_50 = arith.constant dense<0.000000e+00> : vector<16x32xf32>
    %115 = tpu.matmul %112, %114, %cst_50 {dimension_numbers = #tpu.dot_dimension_numbers<[1], [0], [0], [1], [0, 0, 1, 1], [], []>} : vector<16x32xf32>, vector<32x32xf32>, vector<16x32xf32> -> vector<16x32xf32>
    %c0_51 = arith.constant 0 : index
    %c0_52 = arith.constant 0 : index
    %c0_53 = arith.constant 0 : index
    %116 = vector.load %arg9[%c0_51, %c0_52, %c0_53] : memref<2x1x32xf32, #tpu.memory_space<vmem>>, vector<1x1x32xf32>
    %117 = vector.shape_cast %116 : vector<1x1x32xf32> to vector<1x32xf32>
    %118 = vector.broadcast %117 : vector<1x32xf32> to vector<16x32xf32>
    %119 = arith.addf %115, %118 : vector<16x32xf32>
    %120 = arith.addf %11, %119 : vector<16x32xf32>
    %c0_54 = arith.constant 0 : index
    %c0_55 = arith.constant 0 : index
    %c0_56 = arith.constant 0 : index
    %121 = vector.load %arg10[%c0_54, %c0_55, %c0_56] : memref<2x1x32xf32, #tpu.memory_space<vmem>>, vector<1x1x32xf32>
    %122 = vector.shape_cast %121 : vector<1x1x32xf32> to vector<1x32xf32>
    %c0_57 = arith.constant 0 : index
    %c0_58 = arith.constant 0 : index
    %c0_59 = arith.constant 0 : index
    %123 = vector.load %arg11[%c0_57, %c0_58, %c0_59] : memref<2x1x32xf32, #tpu.memory_space<vmem>>, vector<1x1x32xf32>
    %124 = vector.shape_cast %123 : vector<1x1x32xf32> to vector<1x32xf32>
    %cst_60 = arith.constant dense<0.000000e+00> : vector<16xf32>
    %125 = vector.multi_reduction <add>, %120, %cst_60 [1] : vector<16x32xf32> to vector<16xf32>
    %126 = vector.shape_cast %125 : vector<16xf32> to vector<16x1xf32>
    %cst_61 = arith.constant 3.200000e+01 : f32
    %127 = vector.broadcast %cst_61 : f32 to vector<16x1xf32>
    %128 = arith.divf %126, %127 : vector<16x1xf32>
    %129 = vector.broadcast %128 : vector<16x1xf32> to vector<16x32xf32>
    %130 = arith.subf %120, %129 : vector<16x32xf32>
    %131 = arith.mulf %130, %130 : vector<16x32xf32>
    %cst_62 = arith.constant dense<0.000000e+00> : vector<16xf32>
    %132 = vector.multi_reduction <add>, %131, %cst_62 [1] : vector<16x32xf32> to vector<16xf32>
    %133 = vector.shape_cast %132 : vector<16xf32> to vector<16x1xf32>
    %cst_63 = arith.constant 3.200000e+01 : f32
    %134 = vector.broadcast %cst_63 : f32 to vector<16x1xf32>
    %135 = arith.divf %133, %134 : vector<16x1xf32>
    %136 = vector.broadcast %128 : vector<16x1xf32> to vector<16x32xf32>
    %137 = arith.subf %120, %136 : vector<16x32xf32>
    %cst_64 = arith.constant 9.99999974E-6 : f32
    %138 = vector.broadcast %cst_64 : f32 to vector<16x1xf32>
    %139 = arith.addf %135, %138 : vector<16x1xf32>
    %140 = math.rsqrt %139 : vector<16x1xf32>
    %141 = vector.broadcast %140 : vector<16x1xf32> to vector<16x32xf32>
    %142 = arith.mulf %137, %141 : vector<16x32xf32>
    %143 = vector.broadcast %122 : vector<1x32xf32> to vector<16x32xf32>
    %144 = arith.mulf %142, %143 : vector<16x32xf32>
    %145 = vector.broadcast %124 : vector<1x32xf32> to vector<16x32xf32>
    %146 = arith.addf %144, %145 : vector<16x32xf32>
    %c0_65 = arith.constant 0 : index
    %c0_66 = arith.constant 0 : index
    %c0_67 = arith.constant 0 : index
    %147 = vector.load %arg12[%c0_65, %c0_66, %c0_67] : memref<2x32x64xf32, #tpu.memory_space<vmem>>, vector<1x32x64xf32>
    %148 = vector.shape_cast %147 : vector<1x32x64xf32> to vector<32x64xf32>
    %cst_68 = arith.constant dense<0.000000e+00> : vector<16x64xf32>
    %149 = tpu.matmul %146, %148, %cst_68 {dimension_numbers = #tpu.dot_dimension_numbers<[1], [0], [0], [1], [0, 0, 1, 1], [], []>} : vector<16x32xf32>, vector<32x64xf32>, vector<16x64xf32> -> vector<16x64xf32>
    %c0_69 = arith.constant 0 : index
    %c0_70 = arith.constant 0 : index
    %c0_71 = arith.constant 0 : index
    %150 = vector.load %arg13[%c0_69, %c0_70, %c0_71] : memref<2x1x64xf32, #tpu.memory_space<vmem>>, vector<1x1x64xf32>
    %151 = vector.shape_cast %150 : vector<1x1x64xf32> to vector<1x64xf32>
    %152 = vector.broadcast %151 : vector<1x64xf32> to vector<16x64xf32>
    %153 = arith.addf %149, %152 : vector<16x64xf32>
    %cst_72 = arith.constant 0.000000e+00 : f32
    %154 = vector.broadcast %cst_72 : f32 to vector<16x64xf32>
    %155 = arith.maximumf %153, %154 : vector<16x64xf32>
    %c0_73 = arith.constant 0 : index
    %c0_74 = arith.constant 0 : index
    %c0_75 = arith.constant 0 : index
    %156 = vector.load %arg14[%c0_73, %c0_74, %c0_75] : memref<2x64x32xf32, #tpu.memory_space<vmem>>, vector<1x64x32xf32>
    %157 = vector.shape_cast %156 : vector<1x64x32xf32> to vector<64x32xf32>
    %cst_76 = arith.constant dense<0.000000e+00> : vector<16x32xf32>
    %158 = tpu.matmul %155, %157, %cst_76 {dimension_numbers = #tpu.dot_dimension_numbers<[1], [0], [0], [1], [0, 0, 1, 1], [], []>} : vector<16x64xf32>, vector<64x32xf32>, vector<16x32xf32> -> vector<16x32xf32>
    %c0_77 = arith.constant 0 : index
    %c0_78 = arith.constant 0 : index
    %c0_79 = arith.constant 0 : index
    %159 = vector.load %arg15[%c0_77, %c0_78, %c0_79] : memref<2x1x32xf32, #tpu.memory_space<vmem>>, vector<1x1x32xf32>
    %160 = vector.shape_cast %159 : vector<1x1x32xf32> to vector<1x32xf32>
    %161 = vector.broadcast %160 : vector<1x32xf32> to vector<16x32xf32>
    %162 = arith.addf %158, %161 : vector<16x32xf32>
    %163 = arith.addf %146, %162 : vector<16x32xf32>
    %c0_80 = arith.constant 0 : index
    %c0_81 = arith.constant 0 : index
    %c0_82 = arith.constant 0 : index
    %164 = vector.load %arg16[%c0_80, %c0_81, %c0_82] : memref<2x1x32xf32, #tpu.memory_space<vmem>>, vector<1x1x32xf32>
    %165 = vector.shape_cast %164 : vector<1x1x32xf32> to vector<1x32xf32>
    %c0_83 = arith.constant 0 : index
    %c0_84 = arith.constant 0 : index
    %c0_85 = arith.constant 0 : index
    %166 = vector.load %arg17[%c0_83, %c0_84, %c0_85] : memref<2x1x32xf32, #tpu.memory_space<vmem>>, vector<1x1x32xf32>
    %167 = vector.shape_cast %166 : vector<1x1x32xf32> to vector<1x32xf32>
    %cst_86 = arith.constant dense<0.000000e+00> : vector<16xf32>
    %168 = vector.multi_reduction <add>, %163, %cst_86 [1] : vector<16x32xf32> to vector<16xf32>
    %169 = vector.shape_cast %168 : vector<16xf32> to vector<16x1xf32>
    %cst_87 = arith.constant 3.200000e+01 : f32
    %170 = vector.broadcast %cst_87 : f32 to vector<16x1xf32>
    %171 = arith.divf %169, %170 : vector<16x1xf32>
    %172 = vector.broadcast %171 : vector<16x1xf32> to vector<16x32xf32>
    %173 = arith.subf %163, %172 : vector<16x32xf32>
    %174 = arith.mulf %173, %173 : vector<16x32xf32>
    %cst_88 = arith.constant dense<0.000000e+00> : vector<16xf32>
    %175 = vector.multi_reduction <add>, %174, %cst_88 [1] : vector<16x32xf32> to vector<16xf32>
    %176 = vector.shape_cast %175 : vector<16xf32> to vector<16x1xf32>
    %cst_89 = arith.constant 3.200000e+01 : f32
    %177 = vector.broadcast %cst_89 : f32 to vector<16x1xf32>
    %178 = arith.divf %176, %177 : vector<16x1xf32>
    %179 = vector.broadcast %171 : vector<16x1xf32> to vector<16x32xf32>
    %180 = arith.subf %163, %179 : vector<16x32xf32>
    %cst_90 = arith.constant 9.99999974E-6 : f32
    %181 = vector.broadcast %cst_90 : f32 to vector<16x1xf32>
    %182 = arith.addf %178, %181 : vector<16x1xf32>
    %183 = math.rsqrt %182 : vector<16x1xf32>
    %184 = vector.broadcast %183 : vector<16x1xf32> to vector<16x32xf32>
    %185 = arith.mulf %180, %184 : vector<16x32xf32>
    %186 = vector.broadcast %165 : vector<1x32xf32> to vector<16x32xf32>
    %187 = arith.mulf %185, %186 : vector<16x32xf32>
    %188 = vector.broadcast %167 : vector<1x32xf32> to vector<16x32xf32>
    %189 = arith.addf %187, %188 : vector<16x32xf32>
    %c1 = arith.constant 1 : index
    %c0_91 = arith.constant 0 : index
    %c0_92 = arith.constant 0 : index
    %190 = vector.load %arg6[%c1, %c0_91, %c0_92] : memref<2x32x96xf32, #tpu.memory_space<vmem>>, vector<1x32x96xf32>
    %191 = vector.shape_cast %190 : vector<1x32x96xf32> to vector<32x96xf32>
    %cst_93 = arith.constant dense<0.000000e+00> : vector<16x96xf32>
    %192 = tpu.matmul %189, %191, %cst_93 {dimension_numbers = #tpu.dot_dimension_numbers<[1], [0], [0], [1], [0, 0, 1, 1], [], []>} : vector<16x32xf32>, vector<32x96xf32>, vector<16x96xf32> -> vector<16x96xf32>
    %c1_94 = arith.constant 1 : index
    %c0_95 = arith.constant 0 : index
    %c0_96 = arith.constant 0 : index
    %193 = vector.load %arg7[%c1_94, %c0_95, %c0_96] : memref<2x1x96xf32, #tpu.memory_space<vmem>>, vector<1x1x96xf32>
    %194 = vector.shape_cast %193 : vector<1x1x96xf32> to vector<1x96xf32>
    %195 = vector.broadcast %194 : vector<1x96xf32> to vector<16x96xf32>
    %196 = arith.addf %192, %195 : vector<16x96xf32>
    %197 = vector.extract_strided_slice %196 {offsets = [0, 0], sizes = [16, 32], strides = [1, 1]} : vector<16x96xf32> to vector<16x32xf32>
    %198 = vector.shape_cast %197 : vector<16x32xf32> to vector<2x8x32xf32>
    %199 = vector.extract_strided_slice %196 {offsets = [0, 32], sizes = [16, 32], strides = [1, 1]} : vector<16x96xf32> to vector<16x32xf32>
    %200 = vector.shape_cast %199 : vector<16x32xf32> to vector<2x8x32xf32>
    %201 = vector.extract_strided_slice %196 {offsets = [0, 64], sizes = [16, 32], strides = [1, 1]} : vector<16x96xf32> to vector<16x32xf32>
    %202 = vector.shape_cast %201 : vector<16x32xf32> to vector<2x8x32xf32>
    %203 = vector.extract_strided_slice %198 {offsets = [0, 0, 0], sizes = [2, 8, 8], strides = [1, 1, 1]} : vector<2x8x32xf32> to vector<2x8x8xf32>
    %204 = vector.extract_strided_slice %200 {offsets = [0, 0, 0], sizes = [2, 8, 8], strides = [1, 1, 1]} : vector<2x8x32xf32> to vector<2x8x8xf32>
    %205 = vector.extract_strided_slice %202 {offsets = [0, 0, 0], sizes = [2, 8, 8], strides = [1, 1, 1]} : vector<2x8x32xf32> to vector<2x8x8xf32>
    "tpu.trace_start"() <{level = 10 : i32, message = "bqd,bkd->bqk"}> : () -> ()
    %cst_97 = arith.constant dense<0.000000e+00> : vector<2x8x8xf32>
    %206 = tpu.matmul %203, %204, %cst_97 {dimension_numbers = #tpu.dot_dimension_numbers<[2], [2], [1], [1], [0, 0, 0, 1, 1, 1], [0], [0]>} : vector<2x8x8xf32>, vector<2x8x8xf32>, vector<2x8x8xf32> -> vector<2x8x8xf32>
    "tpu.trace_stop"() : () -> ()
    %cst_98 = arith.constant 0.353553385 : f32
    %207 = vector.broadcast %cst_98 : f32 to vector<2x8x8xf32>
    %208 = arith.mulf %206, %207 : vector<2x8x8xf32>
    %209 = arith.addf %208, %21 : vector<2x8x8xf32>
    %cst_99 = arith.constant dense<0xFF800000> : vector<2x8xf32>
    %210 = vector.multi_reduction <maximumf>, %209, %cst_99 [2] : vector<2x8x8xf32> to vector<2x8xf32>
    %cst_100 = arith.constant 0xFF800000 : f32
    %211 = vector.broadcast %cst_100 : f32 to vector<2x8xf32>
    %212 = arith.maximumf %211, %210 : vector<2x8xf32>
    %213 = vector.shape_cast %212 : vector<2x8xf32> to vector<2x8x1xf32>
    %214 = vector.broadcast %213 : vector<2x8x1xf32> to vector<2x8x8xf32>
    %215 = arith.subf %209, %214 : vector<2x8x8xf32>
    %216 = math.exp %215 : vector<2x8x8xf32>
    %cst_101 = arith.constant dense<0.000000e+00> : vector<2x8xf32>
    %217 = vector.multi_reduction <add>, %216, %cst_101 [2] : vector<2x8x8xf32> to vector<2x8xf32>
    %218 = vector.shape_cast %217 : vector<2x8xf32> to vector<2x8x1xf32>
    %219 = vector.broadcast %218 : vector<2x8x1xf32> to vector<2x8x8xf32>
    %220 = arith.divf %216, %219 : vector<2x8x8xf32>
    "tpu.trace_start"() <{level = 10 : i32, message = "bqk,bkd->bqd"}> : () -> ()
    %cst_102 = arith.constant dense<0.000000e+00> : vector<2x8x8xf32>
    %221 = tpu.matmul %220, %205, %cst_102 {dimension_numbers = #tpu.dot_dimension_numbers<[2], [1], [1], [2], [0, 0, 0, 1, 1, 2], [0], [0]>} : vector<2x8x8xf32>, vector<2x8x8xf32>, vector<2x8x8xf32> -> vector<2x8x8xf32>
    "tpu.trace_stop"() : () -> ()
    %222 = vector.extract_strided_slice %198 {offsets = [0, 0, 8], sizes = [2, 8, 8], strides = [1, 1, 1]} : vector<2x8x32xf32> to vector<2x8x8xf32>
    %223 = vector.extract_strided_slice %200 {offsets = [0, 0, 8], sizes = [2, 8, 8], strides = [1, 1, 1]} : vector<2x8x32xf32> to vector<2x8x8xf32>
    %224 = vector.extract_strided_slice %202 {offsets = [0, 0, 8], sizes = [2, 8, 8], strides = [1, 1, 1]} : vector<2x8x32xf32> to vector<2x8x8xf32>
    "tpu.trace_start"() <{level = 10 : i32, message = "bqd,bkd->bqk"}> : () -> ()
    %cst_103 = arith.constant dense<0.000000e+00> : vector<2x8x8xf32>
    %225 = tpu.matmul %222, %223, %cst_103 {dimension_numbers = #tpu.dot_dimension_numbers<[2], [2], [1], [1], [0, 0, 0, 1, 1, 1], [0], [0]>} : vector<2x8x8xf32>, vector<2x8x8xf32>, vector<2x8x8xf32> -> vector<2x8x8xf32>
    "tpu.trace_stop"() : () -> ()
    %cst_104 = arith.constant 0.353553385 : f32
    %226 = vector.broadcast %cst_104 : f32 to vector<2x8x8xf32>
    %227 = arith.mulf %225, %226 : vector<2x8x8xf32>
    %228 = arith.addf %227, %21 : vector<2x8x8xf32>
    %cst_105 = arith.constant dense<0xFF800000> : vector<2x8xf32>
    %229 = vector.multi_reduction <maximumf>, %228, %cst_105 [2] : vector<2x8x8xf32> to vector<2x8xf32>
    %cst_106 = arith.constant 0xFF800000 : f32
    %230 = vector.broadcast %cst_106 : f32 to vector<2x8xf32>
    %231 = arith.maximumf %230, %229 : vector<2x8xf32>
    %232 = vector.shape_cast %231 : vector<2x8xf32> to vector<2x8x1xf32>
    %233 = vector.broadcast %232 : vector<2x8x1xf32> to vector<2x8x8xf32>
    %234 = arith.subf %228, %233 : vector<2x8x8xf32>
    %235 = math.exp %234 : vector<2x8x8xf32>
    %cst_107 = arith.constant dense<0.000000e+00> : vector<2x8xf32>
    %236 = vector.multi_reduction <add>, %235, %cst_107 [2] : vector<2x8x8xf32> to vector<2x8xf32>
    %237 = vector.shape_cast %236 : vector<2x8xf32> to vector<2x8x1xf32>
    %238 = vector.broadcast %237 : vector<2x8x1xf32> to vector<2x8x8xf32>
    %239 = arith.divf %235, %238 : vector<2x8x8xf32>
    "tpu.trace_start"() <{level = 10 : i32, message = "bqk,bkd->bqd"}> : () -> ()
    %cst_108 = arith.constant dense<0.000000e+00> : vector<2x8x8xf32>
    %240 = tpu.matmul %239, %224, %cst_108 {dimension_numbers = #tpu.dot_dimension_numbers<[2], [1], [1], [2], [0, 0, 0, 1, 1, 2], [0], [0]>} : vector<2x8x8xf32>, vector<2x8x8xf32>, vector<2x8x8xf32> -> vector<2x8x8xf32>
    "tpu.trace_stop"() : () -> ()
    %241 = vector.extract_strided_slice %198 {offsets = [0, 0, 16], sizes = [2, 8, 8], strides = [1, 1, 1]} : vector<2x8x32xf32> to vector<2x8x8xf32>
    %242 = vector.extract_strided_slice %200 {offsets = [0, 0, 16], sizes = [2, 8, 8], strides = [1, 1, 1]} : vector<2x8x32xf32> to vector<2x8x8xf32>
    %243 = vector.extract_strided_slice %202 {offsets = [0, 0, 16], sizes = [2, 8, 8], strides = [1, 1, 1]} : vector<2x8x32xf32> to vector<2x8x8xf32>
    "tpu.trace_start"() <{level = 10 : i32, message = "bqd,bkd->bqk"}> : () -> ()
    %cst_109 = arith.constant dense<0.000000e+00> : vector<2x8x8xf32>
    %244 = tpu.matmul %241, %242, %cst_109 {dimension_numbers = #tpu.dot_dimension_numbers<[2], [2], [1], [1], [0, 0, 0, 1, 1, 1], [0], [0]>} : vector<2x8x8xf32>, vector<2x8x8xf32>, vector<2x8x8xf32> -> vector<2x8x8xf32>
    "tpu.trace_stop"() : () -> ()
    %cst_110 = arith.constant 0.353553385 : f32
    %245 = vector.broadcast %cst_110 : f32 to vector<2x8x8xf32>
    %246 = arith.mulf %244, %245 : vector<2x8x8xf32>
    %247 = arith.addf %246, %21 : vector<2x8x8xf32>
    %cst_111 = arith.constant dense<0xFF800000> : vector<2x8xf32>
    %248 = vector.multi_reduction <maximumf>, %247, %cst_111 [2] : vector<2x8x8xf32> to vector<2x8xf32>
    %cst_112 = arith.constant 0xFF800000 : f32
    %249 = vector.broadcast %cst_112 : f32 to vector<2x8xf32>
    %250 = arith.maximumf %249, %248 : vector<2x8xf32>
    %251 = vector.shape_cast %250 : vector<2x8xf32> to vector<2x8x1xf32>
    %252 = vector.broadcast %251 : vector<2x8x1xf32> to vector<2x8x8xf32>
    %253 = arith.subf %247, %252 : vector<2x8x8xf32>
    %254 = math.exp %253 : vector<2x8x8xf32>
    %cst_113 = arith.constant dense<0.000000e+00> : vector<2x8xf32>
    %255 = vector.multi_reduction <add>, %254, %cst_113 [2] : vector<2x8x8xf32> to vector<2x8xf32>
    %256 = vector.shape_cast %255 : vector<2x8xf32> to vector<2x8x1xf32>
    %257 = vector.broadcast %256 : vector<2x8x1xf32> to vector<2x8x8xf32>
    %258 = arith.divf %254, %257 : vector<2x8x8xf32>
    "tpu.trace_start"() <{level = 10 : i32, message = "bqk,bkd->bqd"}> : () -> ()
    %cst_114 = arith.constant dense<0.000000e+00> : vector<2x8x8xf32>
    %259 = tpu.matmul %258, %243, %cst_114 {dimension_numbers = #tpu.dot_dimension_numbers<[2], [1], [1], [2], [0, 0, 0, 1, 1, 2], [0], [0]>} : vector<2x8x8xf32>, vector<2x8x8xf32>, vector<2x8x8xf32> -> vector<2x8x8xf32>
    "tpu.trace_stop"() : () -> ()
    %260 = vector.extract_strided_slice %198 {offsets = [0, 0, 24], sizes = [2, 8, 8], strides = [1, 1, 1]} : vector<2x8x32xf32> to vector<2x8x8xf32>
    %261 = vector.extract_strided_slice %200 {offsets = [0, 0, 24], sizes = [2, 8, 8], strides = [1, 1, 1]} : vector<2x8x32xf32> to vector<2x8x8xf32>
    %262 = vector.extract_strided_slice %202 {offsets = [0, 0, 24], sizes = [2, 8, 8], strides = [1, 1, 1]} : vector<2x8x32xf32> to vector<2x8x8xf32>
    "tpu.trace_start"() <{level = 10 : i32, message = "bqd,bkd->bqk"}> : () -> ()
    %cst_115 = arith.constant dense<0.000000e+00> : vector<2x8x8xf32>
    %263 = tpu.matmul %260, %261, %cst_115 {dimension_numbers = #tpu.dot_dimension_numbers<[2], [2], [1], [1], [0, 0, 0, 1, 1, 1], [0], [0]>} : vector<2x8x8xf32>, vector<2x8x8xf32>, vector<2x8x8xf32> -> vector<2x8x8xf32>
    "tpu.trace_stop"() : () -> ()
    %cst_116 = arith.constant 0.353553385 : f32
    %264 = vector.broadcast %cst_116 : f32 to vector<2x8x8xf32>
    %265 = arith.mulf %263, %264 : vector<2x8x8xf32>
    %266 = arith.addf %265, %21 : vector<2x8x8xf32>
    %cst_117 = arith.constant dense<0xFF800000> : vector<2x8xf32>
    %267 = vector.multi_reduction <maximumf>, %266, %cst_117 [2] : vector<2x8x8xf32> to vector<2x8xf32>
    %cst_118 = arith.constant 0xFF800000 : f32
    %268 = vector.broadcast %cst_118 : f32 to vector<2x8xf32>
    %269 = arith.maximumf %268, %267 : vector<2x8xf32>
    %270 = vector.shape_cast %269 : vector<2x8xf32> to vector<2x8x1xf32>
    %271 = vector.broadcast %270 : vector<2x8x1xf32> to vector<2x8x8xf32>
    %272 = arith.subf %266, %271 : vector<2x8x8xf32>
    %273 = math.exp %272 : vector<2x8x8xf32>
    %cst_119 = arith.constant dense<0.000000e+00> : vector<2x8xf32>
    %274 = vector.multi_reduction <add>, %273, %cst_119 [2] : vector<2x8x8xf32> to vector<2x8xf32>
    %275 = vector.shape_cast %274 : vector<2x8xf32> to vector<2x8x1xf32>
    %276 = vector.broadcast %275 : vector<2x8x1xf32> to vector<2x8x8xf32>
    %277 = arith.divf %273, %276 : vector<2x8x8xf32>
    "tpu.trace_start"() <{level = 10 : i32, message = "bqk,bkd->bqd"}> : () -> ()
    %cst_120 = arith.constant dense<0.000000e+00> : vector<2x8x8xf32>
    %278 = tpu.matmul %277, %262, %cst_120 {dimension_numbers = #tpu.dot_dimension_numbers<[2], [1], [1], [2], [0, 0, 0, 1, 1, 2], [0], [0]>} : vector<2x8x8xf32>, vector<2x8x8xf32>, vector<2x8x8xf32> -> vector<2x8x8xf32>
    "tpu.trace_stop"() : () -> ()
    %279 = tpu.concatenate %221, %240, %259, %278 in 2 : vector<2x8x8xf32>, vector<2x8x8xf32>, vector<2x8x8xf32>, vector<2x8x8xf32> -> vector<2x8x32xf32>
    %280 = vector.shape_cast %279 : vector<2x8x32xf32> to vector<16x32xf32>
    %c1_121 = arith.constant 1 : index
    %c0_122 = arith.constant 0 : index
    %c0_123 = arith.constant 0 : index
    %281 = vector.load %arg8[%c1_121, %c0_122, %c0_123] : memref<2x32x32xf32, #tpu.memory_space<vmem>>, vector<1x32x32xf32>
    %282 = vector.shape_cast %281 : vector<1x32x32xf32> to vector<32x32xf32>
    %cst_124 = arith.constant dense<0.000000e+00> : vector<16x32xf32>
    %283 = tpu.matmul %280, %282, %cst_124 {dimension_numbers = #tpu.dot_dimension_numbers<[1], [0], [0], [1], [0, 0, 1, 1], [], []>} : vector<16x32xf32>, vector<32x32xf32>, vector<16x32xf32> -> vector<16x32xf32>
    %c1_125 = arith.constant 1 : index
    %c0_126 = arith.constant 0 : index
    %c0_127 = arith.constant 0 : index
    %284 = vector.load %arg9[%c1_125, %c0_126, %c0_127] : memref<2x1x32xf32, #tpu.memory_space<vmem>>, vector<1x1x32xf32>
    %285 = vector.shape_cast %284 : vector<1x1x32xf32> to vector<1x32xf32>
    %286 = vector.broadcast %285 : vector<1x32xf32> to vector<16x32xf32>
    %287 = arith.addf %283, %286 : vector<16x32xf32>
    %288 = arith.addf %189, %287 : vector<16x32xf32>
    %c1_128 = arith.constant 1 : index
    %c0_129 = arith.constant 0 : index
    %c0_130 = arith.constant 0 : index
    %289 = vector.load %arg10[%c1_128, %c0_129, %c0_130] : memref<2x1x32xf32, #tpu.memory_space<vmem>>, vector<1x1x32xf32>
    %290 = vector.shape_cast %289 : vector<1x1x32xf32> to vector<1x32xf32>
    %c1_131 = arith.constant 1 : index
    %c0_132 = arith.constant 0 : index
    %c0_133 = arith.constant 0 : index
    %291 = vector.load %arg11[%c1_131, %c0_132, %c0_133] : memref<2x1x32xf32, #tpu.memory_space<vmem>>, vector<1x1x32xf32>
    %292 = vector.shape_cast %291 : vector<1x1x32xf32> to vector<1x32xf32>
    %cst_134 = arith.constant dense<0.000000e+00> : vector<16xf32>
    %293 = vector.multi_reduction <add>, %288, %cst_134 [1] : vector<16x32xf32> to vector<16xf32>
    %294 = vector.shape_cast %293 : vector<16xf32> to vector<16x1xf32>
    %cst_135 = arith.constant 3.200000e+01 : f32
    %295 = vector.broadcast %cst_135 : f32 to vector<16x1xf32>
    %296 = arith.divf %294, %295 : vector<16x1xf32>
    %297 = vector.broadcast %296 : vector<16x1xf32> to vector<16x32xf32>
    %298 = arith.subf %288, %297 : vector<16x32xf32>
    %299 = arith.mulf %298, %298 : vector<16x32xf32>
    %cst_136 = arith.constant dense<0.000000e+00> : vector<16xf32>
    %300 = vector.multi_reduction <add>, %299, %cst_136 [1] : vector<16x32xf32> to vector<16xf32>
    %301 = vector.shape_cast %300 : vector<16xf32> to vector<16x1xf32>
    %cst_137 = arith.constant 3.200000e+01 : f32
    %302 = vector.broadcast %cst_137 : f32 to vector<16x1xf32>
    %303 = arith.divf %301, %302 : vector<16x1xf32>
    %304 = vector.broadcast %296 : vector<16x1xf32> to vector<16x32xf32>
    %305 = arith.subf %288, %304 : vector<16x32xf32>
    %cst_138 = arith.constant 9.99999974E-6 : f32
    %306 = vector.broadcast %cst_138 : f32 to vector<16x1xf32>
    %307 = arith.addf %303, %306 : vector<16x1xf32>
    %308 = math.rsqrt %307 : vector<16x1xf32>
    %309 = vector.broadcast %308 : vector<16x1xf32> to vector<16x32xf32>
    %310 = arith.mulf %305, %309 : vector<16x32xf32>
    %311 = vector.broadcast %290 : vector<1x32xf32> to vector<16x32xf32>
    %312 = arith.mulf %310, %311 : vector<16x32xf32>
    %313 = vector.broadcast %292 : vector<1x32xf32> to vector<16x32xf32>
    %314 = arith.addf %312, %313 : vector<16x32xf32>
    %c1_139 = arith.constant 1 : index
    %c0_140 = arith.constant 0 : index
    %c0_141 = arith.constant 0 : index
    %315 = vector.load %arg12[%c1_139, %c0_140, %c0_141] : memref<2x32x64xf32, #tpu.memory_space<vmem>>, vector<1x32x64xf32>
    %316 = vector.shape_cast %315 : vector<1x32x64xf32> to vector<32x64xf32>
    %cst_142 = arith.constant dense<0.000000e+00> : vector<16x64xf32>
    %317 = tpu.matmul %314, %316, %cst_142 {dimension_numbers = #tpu.dot_dimension_numbers<[1], [0], [0], [1], [0, 0, 1, 1], [], []>} : vector<16x32xf32>, vector<32x64xf32>, vector<16x64xf32> -> vector<16x64xf32>
    %c1_143 = arith.constant 1 : index
    %c0_144 = arith.constant 0 : index
    %c0_145 = arith.constant 0 : index
    %318 = vector.load %arg13[%c1_143, %c0_144, %c0_145] : memref<2x1x64xf32, #tpu.memory_space<vmem>>, vector<1x1x64xf32>
    %319 = vector.shape_cast %318 : vector<1x1x64xf32> to vector<1x64xf32>
    %320 = vector.broadcast %319 : vector<1x64xf32> to vector<16x64xf32>
    %321 = arith.addf %317, %320 : vector<16x64xf32>
    %cst_146 = arith.constant 0.000000e+00 : f32
    %322 = vector.broadcast %cst_146 : f32 to vector<16x64xf32>
    %323 = arith.maximumf %321, %322 : vector<16x64xf32>
    %c1_147 = arith.constant 1 : index
    %c0_148 = arith.constant 0 : index
    %c0_149 = arith.constant 0 : index
    %324 = vector.load %arg14[%c1_147, %c0_148, %c0_149] : memref<2x64x32xf32, #tpu.memory_space<vmem>>, vector<1x64x32xf32>
    %325 = vector.shape_cast %324 : vector<1x64x32xf32> to vector<64x32xf32>
    %cst_150 = arith.constant dense<0.000000e+00> : vector<16x32xf32>
    %326 = tpu.matmul %323, %325, %cst_150 {dimension_numbers = #tpu.dot_dimension_numbers<[1], [0], [0], [1], [0, 0, 1, 1], [], []>} : vector<16x64xf32>, vector<64x32xf32>, vector<16x32xf32> -> vector<16x32xf32>
    %c1_151 = arith.constant 1 : index
    %c0_152 = arith.constant 0 : index
    %c0_153 = arith.constant 0 : index
    %327 = vector.load %arg15[%c1_151, %c0_152, %c0_153] : memref<2x1x32xf32, #tpu.memory_space<vmem>>, vector<1x1x32xf32>
    %328 = vector.shape_cast %327 : vector<1x1x32xf32> to vector<1x32xf32>
    %329 = vector.broadcast %328 : vector<1x32xf32> to vector<16x32xf32>
    %330 = arith.addf %326, %329 : vector<16x32xf32>
    %331 = arith.addf %314, %330 : vector<16x32xf32>
    %c1_154 = arith.constant 1 : index
    %c0_155 = arith.constant 0 : index
    %c0_156 = arith.constant 0 : index
    %332 = vector.load %arg16[%c1_154, %c0_155, %c0_156] : memref<2x1x32xf32, #tpu.memory_space<vmem>>, vector<1x1x32xf32>
    %333 = vector.shape_cast %332 : vector<1x1x32xf32> to vector<1x32xf32>
    %c1_157 = arith.constant 1 : index
    %c0_158 = arith.constant 0 : index
    %c0_159 = arith.constant 0 : index
    %334 = vector.load %arg17[%c1_157, %c0_158, %c0_159] : memref<2x1x32xf32, #tpu.memory_space<vmem>>, vector<1x1x32xf32>
    %335 = vector.shape_cast %334 : vector<1x1x32xf32> to vector<1x32xf32>
    %cst_160 = arith.constant dense<0.000000e+00> : vector<16xf32>
    %336 = vector.multi_reduction <add>, %331, %cst_160 [1] : vector<16x32xf32> to vector<16xf32>
    %337 = vector.shape_cast %336 : vector<16xf32> to vector<16x1xf32>
    %cst_161 = arith.constant 3.200000e+01 : f32
    %338 = vector.broadcast %cst_161 : f32 to vector<16x1xf32>
    %339 = arith.divf %337, %338 : vector<16x1xf32>
    %340 = vector.broadcast %339 : vector<16x1xf32> to vector<16x32xf32>
    %341 = arith.subf %331, %340 : vector<16x32xf32>
    %342 = arith.mulf %341, %341 : vector<16x32xf32>
    %cst_162 = arith.constant dense<0.000000e+00> : vector<16xf32>
    %343 = vector.multi_reduction <add>, %342, %cst_162 [1] : vector<16x32xf32> to vector<16xf32>
    %344 = vector.shape_cast %343 : vector<16xf32> to vector<16x1xf32>
    %cst_163 = arith.constant 3.200000e+01 : f32
    %345 = vector.broadcast %cst_163 : f32 to vector<16x1xf32>
    %346 = arith.divf %344, %345 : vector<16x1xf32>
    %347 = vector.broadcast %339 : vector<16x1xf32> to vector<16x32xf32>
    %348 = arith.subf %331, %347 : vector<16x32xf32>
    %cst_164 = arith.constant 9.99999974E-6 : f32
    %349 = vector.broadcast %cst_164 : f32 to vector<16x1xf32>
    %350 = arith.addf %346, %349 : vector<16x1xf32>
    %351 = math.rsqrt %350 : vector<16x1xf32>
    %352 = vector.broadcast %351 : vector<16x1xf32> to vector<16x32xf32>
    %353 = arith.mulf %348, %352 : vector<16x32xf32>
    %354 = vector.broadcast %333 : vector<1x32xf32> to vector<16x32xf32>
    %355 = arith.mulf %353, %354 : vector<16x32xf32>
    %356 = vector.broadcast %335 : vector<1x32xf32> to vector<16x32xf32>
    %357 = arith.addf %355, %356 : vector<16x32xf32>
    %358 = vector.shape_cast %357 : vector<16x32xf32> to vector<2x8x32xf32>
    %cst_165 = arith.constant dense<0.000000e+00> : vector<2x32xf32>
    %359 = vector.multi_reduction <add>, %358, %cst_165 [1] : vector<2x8x32xf32> to vector<2x32xf32>
    %cst_166 = arith.constant 8.000000e+00 : f32
    %360 = vector.broadcast %cst_166 : f32 to vector<2x32xf32>
    %361 = arith.divf %359, %360 : vector<2x32xf32>
    %c0_167 = arith.constant 0 : index
    %c0_168 = arith.constant 0 : index
    %362 = vector.load %arg18[%c0_167, %c0_168] : memref<32x32xf32, #tpu.memory_space<vmem>>, vector<32x32xf32>
    %cst_169 = arith.constant dense<0.000000e+00> : vector<2x32xf32>
    %363 = tpu.matmul %361, %362, %cst_169 {dimension_numbers = #tpu.dot_dimension_numbers<[1], [0], [0], [1], [0, 0, 1, 1], [], []>} : vector<2x32xf32>, vector<32x32xf32>, vector<2x32xf32> -> vector<2x32xf32>
    %c0_170 = arith.constant 0 : index
    %c0_171 = arith.constant 0 : index
    %364 = vector.load %arg19[%c0_170, %c0_171] : memref<1x32xf32, #tpu.memory_space<vmem>>, vector<1x32xf32>
    %365 = vector.broadcast %364 : vector<1x32xf32> to vector<2x32xf32>
    %366 = arith.addf %363, %365 : vector<2x32xf32>
    %cst_172 = arith.constant dense<0.000000e+00> : vector<32xf32>
    %367 = vector.multi_reduction <add>, %366, %cst_172 [0] : vector<2x32xf32> to vector<32xf32>
    %368 = vector.shape_cast %367 : vector<32xf32> to vector<1x32xf32>
    %cst_173 = arith.constant 2.000000e+00 : f32
    %369 = vector.broadcast %cst_173 : f32 to vector<1x32xf32>
    %370 = arith.divf %368, %369 : vector<1x32xf32>
    %371 = vector.broadcast %370 : vector<1x32xf32> to vector<2x32xf32>
    %372 = arith.subf %366, %371 : vector<2x32xf32>
    %373 = arith.mulf %372, %372 : vector<2x32xf32>
    %cst_174 = arith.constant dense<0.000000e+00> : vector<32xf32>
    %374 = vector.multi_reduction <add>, %373, %cst_174 [0] : vector<2x32xf32> to vector<32xf32>
    %375 = vector.shape_cast %374 : vector<32xf32> to vector<1x32xf32>
    %cst_175 = arith.constant 2.000000e+00 : f32
    %376 = vector.broadcast %cst_175 : f32 to vector<1x32xf32>
    %377 = arith.divf %375, %376 : vector<1x32xf32>
    %378 = vector.broadcast %370 : vector<1x32xf32> to vector<2x32xf32>
    %379 = arith.subf %366, %378 : vector<2x32xf32>
    %cst_176 = arith.constant 9.99999974E-6 : f32
    %380 = vector.broadcast %cst_176 : f32 to vector<1x32xf32>
    %381 = arith.addf %377, %380 : vector<1x32xf32>
    %382 = math.rsqrt %381 : vector<1x32xf32>
    %383 = vector.broadcast %382 : vector<1x32xf32> to vector<2x32xf32>
    %384 = arith.mulf %379, %383 : vector<2x32xf32>
    %c0_177 = arith.constant 0 : index
    %c0_178 = arith.constant 0 : index
    %385 = vector.load %arg20[%c0_177, %c0_178] : memref<1x32xf32, #tpu.memory_space<vmem>>, vector<1x32xf32>
    %386 = vector.broadcast %385 : vector<1x32xf32> to vector<2x32xf32>
    %387 = arith.mulf %384, %386 : vector<2x32xf32>
    %c0_179 = arith.constant 0 : index
    %c0_180 = arith.constant 0 : index
    %388 = vector.load %arg21[%c0_179, %c0_180] : memref<1x32xf32, #tpu.memory_space<vmem>>, vector<1x32xf32>
    %389 = vector.broadcast %388 : vector<1x32xf32> to vector<2x32xf32>
    %390 = arith.addf %387, %389 : vector<2x32xf32>
    %391 = math.tanh %390 : vector<2x32xf32>
    %c0_181 = arith.constant 0 : index
    %c0_182 = arith.constant 0 : index
    %392 = vector.load %arg22[%c0_181, %c0_182] : memref<32x2xf32, #tpu.memory_space<vmem>>, vector<32x2xf32>
    %cst_183 = arith.constant dense<0.000000e+00> : vector<2x2xf32>
    %393 = tpu.matmul %391, %392, %cst_183 {dimension_numbers = #tpu.dot_dimension_numbers<[1], [0], [0], [1], [0, 0, 1, 1], [], []>} : vector<2x32xf32>, vector<32x2xf32>, vector<2x2xf32> -> vector<2x2xf32>
    %c0_184 = arith.constant 0 : index
    %c0_185 = arith.constant 0 : index
    %394 = vector.load %arg23[%c0_184, %c0_185] : memref<1x2xf32, #tpu.memory_space<vmem>>, vector<1x2xf32>
    %395 = vector.broadcast %394 : vector<1x2xf32> to vector<2x2xf32>
    %396 = arith.addf %393, %395 : vector<2x2xf32>
    %c0_186 = arith.constant 0 : index
    %c0_187 = arith.constant 0 : index
    %397 = vector.load %arg24[%c0_186, %c0_187] : memref<2x2xf32, #tpu.memory_space<vmem>>, vector<2x2xf32>
    tpu.vector_store %arg24[%c0_186, %c0_187], %396 {strides = array<i32>} : memref<2x2xf32, #tpu.memory_space<vmem>>, vector<2x2xf32>,
    return
  }
}

</mosaic_0001>

<bundles_post_ra>
// kernel: tpu_custom_call.1
= control target key start
LH: loop header
LB: loop body
LE: loop exit
PB: predicated region body
PF: predicated region fallthrough
CT: control target
= control target key end

     0   :  { %s5918_s0 = inlined_call_operand.hbm [shape: f32[16,16], index: 0, kind: input, shape index: {}]   ;;  %s5919_s1 = inlined_call_operand.vmem [shape: f32[8,32], index: 1, kind: input, shape index: {}]   ;;  %s5920_s2 = inlined_call_operand.hbm [shape: f32[16,32], index: 2, kind: input, shape index: {}]   ;;  %s5921_s3 = inlined_call_operand.vmem [shape: f32[1,32], index: 3, kind: input, shape index: {}]   ;;  %s5922_s4 = inlined_call_operand.vmem [shape: f32[2,8,1], index: 4, kind: input, shape index: {}]   ;;  %s5923_s5 = inlined_call_operand.vmem [shape: f32[2,1,8], index: 5, kind: input, shape index: {}]   ;;  %s5924_s6 = inlined_call_operand.vmem [shape: f32[2,32,96], index: 6, kind: input, shape index: {}]   ;;  %s5925_s7 = inlined_call_operand.vmem [shape: f32[2,1,96], index: 7, kind: input, shape index: {}]   ;;  %s5926_s8 = inlined_call_operand.vmem [shape: f32[2,32,32], index: 8, kind: input, shape index: {}]   ;;  %s5927_s9 = inlined_call_operand.hbm [shape: f32[2,1,32], index: 9, kind: input, shape index: {}]   ;;  %s5928_s10 = inlined_call_operand.hbm [shape: f32[2,1,32], index: 10, kind: input, shape index: {}]   ;;  %s5929_s11 = inlined_call_operand.hbm [shape: f32[2,1,32], index: 11, kind: input, shape index: {}]   ;;  %s5930_s12 = inlined_call_operand.vmem [shape: f32[2,32,64], index: 12, kind: input, shape index: {}]   ;;  %s5931_s13 = inlined_call_operand.hbm [shape: f32[2,1,64], index: 13, kind: input, shape index: {}]   ;;  %s5932_s14 = inlined_call_operand.vmem [shape: f32[2,64,32], index: 14, kind: input, shape index: {}]   ;;  %s5933_s15 = inlined_call_operand.hbm [shape: f32[2,1,32], index: 15, kind: input, shape index: {}]   ;;  %s5934_s16 = inlined_call_operand.vmem [shape: f32[2,1,32], index: 16, kind: input, shape index: {}]   ;;  %s5935_s17 = inlined_call_operand.hbm [shape: f32[2,1,32], index: 17, kind: input, shape index: {}]   ;;  %s5936_s18 = inlined_call_operand.hbm [shape: f32[32,32], index: 18, kind: input, shape index: {}]   ;;  %s5937_s19 = inlined_call_operand.vmem [shape: f32[1,32], index: 19, kind: input, shape index: {}]   ;;  %s5938_s20 = inlined_call_operand.vmem [shape: f32[1,32], index: 20, kind: input, shape index: {}]   ;;  %s5939_s21 = inlined_call_operand.vmem [shape: f32[1,32], index: 21, kind: input, shape index: {}]   ;;  %s5940_s22 = inlined_call_operand.vmem [shape: f32[32,2], index: 22, kind: input, shape index: {}]   ;;  %s5941_s23 = inlined_call_operand.vmem [shape: f32[1,2], index: 23, kind: input, shape index: {}]   ;;  %s5942_s24 = inlined_call_operand.hbm [shape: f32[2,2], index: 24, kind: output, shape index: {}]  }
   0x1   :  { %5954 = sst [smem:[#allocation24_spill]] %s5918_s0 }
   0x2   :  { %5955 = sst [smem:[#allocation25_spill]] %s5919_s1 }
   0x3   :  { %5956 = sst [smem:[#allocation26_spill]] %s5920_s2 }
   0x4   :  { %5957 = sst [smem:[#allocation27_spill]] %s5921_s3 }
   0x5   :  { %5958 = sst [smem:[#allocation28_spill]] %s5922_s4 }
   0x6   :  { %5959 = sst [smem:[#allocation29_spill]] %s5923_s5 }
   0x7   :  { %5960 = sst [smem:[#allocation30_spill]] %s5924_s6 }
   0x8   :  { %5961 = sst [smem:[#allocation31_spill]] %s5925_s7 }
   0x9   :  { %5962 = sst [smem:[#allocation32_spill]] %s5926_s8 }
   0xa   :  { %29 = vsyncpa [#allocation3], 0 }
   0xb   :  { %30 = vsyncpa [#allocation6], 0 }
   0xc   :  { %31 = vsyncpa [#allocation9], 0 }
   0xd   :  { %32 = vsyncpa [#allocation12], 0 }
   0xe   :  { %33 = vsyncpa [#allocation15], 0 }
   0xf   :  { %34 = vsyncpa [#allocation4], 0  ;;  %s5121_s5 = smov [#allocation5]  }
  0x10   :  { %s54_s26 = sshll.u32 %s5121_s5, 4  ;;  %s55_s26 = int_to_ptr.vmem [resolvable:$true] %s54_s26 }
  0x11   :  { %s4917_s27 = scalar_lea.vmem %s55_s26, 256  ;;  %p4922_p1 = scmp.lt.s32.totalorder %s55_s26, %s55_s26 }
  0x12   :  { %p4918_p0 = scmp.ne.s32.totalorder %s55_s26, %s4917_s27  ;;  %p4923_p2 = scmp.lt.s32.totalorder %s4917_s27, %s4917_s27 }
  0x14   :  { %p4924_p3 = por %p4923_p2, %p4922_p1 }
  0x16   :  { %p4925_p4 = pnand %p4924_p3, %p4918_p0 }
  0x18   :  { %4928 = shalt.err (!%p4925_p4)
}
  0x19   :  { %s5122_s28 = smov 128   ;;  %s5950_s6 = smov 8  }
  0x1a   :  { %s5963_s0 = sld [smem:[#allocation26_spill]]  ;;  %s5124_s7 = smov [#allocation8]  }
  0x1b   :  { %s90_s30 = sshll.u32 %s5124_s7, 4  ;;  %s5125_s3 = smov [#allocation11]   ;;  %s91_s30 = int_to_ptr.vmem [resolvable:$true] %s90_s30 }
  0x1c   :  { %s116_s25 = sshll.u32 %s5125_s3, 4  ;;  %s4937_s8 = scalar_lea.vmem %s91_s30, 32  ;;  %s117_s25 = int_to_ptr.vmem [resolvable:$true] %s116_s25 }
  0x1d   :  { %p4938_p5 = scmp.ne.s32.totalorder %s91_s30, %s4937_s8  ;;  %p4942_p6 = scmp.lt.s32.totalorder %s91_s30, %s91_s30 }
  0x1e   :  { %p4943_p7 = scmp.lt.s32.totalorder %s4937_s8, %s4937_s8 }
  0x20   :  { %60 = dma.hbm_to_vmem [thread:$0]  %s5963_s0, 256, %s55_s26, [#allocation6], %s5122_s28, %s5122_s28, %s5950_s6  }
  0x21   :  { %p4944_p8 = por %p4943_p7, %p4942_p6 }
  0x23   :  { %p4945_p9 = pnand %p4944_p8, %p4938_p5 }
  0x25   :  { %4948 = shalt.err (!%p4945_p9)
}
  0x26   :  { %s5948_s4 = smov 16   ;;  %s5127_s1 = smov 1  }
  0x27   :  { %96 = dma.hbm_to_vmem [thread:$0]  %s5928_s10, 32, %s91_s30, [#allocation9], %s5948_s4, %s5948_s4, %s5127_s1  }
  0x28   :  { %s4957_s26 = scalar_lea.vmem %s117_s25, 32  ;;  %p4962_p11 = scmp.lt.s32.totalorder %s117_s25, %s117_s25 }
  0x29   :  { %p4958_p10 = scmp.ne.s32.totalorder %s117_s25, %s4957_s26  ;;  %p4963_p12 = scmp.lt.s32.totalorder %s4957_s26, %s4957_s26 }
  0x2b   :  { %p4964_p13 = por %p4963_p12, %p4962_p11 }
  0x2d   :  { %p4965_p0 = pnand %p4964_p13, %p4958_p10 }
  0x2f   :  { %4968 = shalt.err (!%p4965_p0)
}
  0x30   :  { %122 = dma.hbm_to_vmem [thread:$0]  %s5931_s13, 32, %s117_s25, [#allocation12], %s5948_s4, %s5948_s4, %s5127_s1  }
  0x31   :  { %s5128_s0 = smov [#allocation14]   ;;  %s5129_s3 = smov [#allocation2]  }
  0x32   :  { %s144_s7 = sshll.u32 %s5128_s0, 4  ;;  %s40_s10 = sshll.u32 %s5129_s3, 4  ;;  %s145_s7 = int_to_ptr.vmem [resolvable:$true] %s144_s7  ;;  %s41_s10 = int_to_ptr.vmem [resolvable:$true] %s40_s10 }
  0x33   :  { %s4977_s30 = scalar_lea.vmem %s145_s7, 32  ;;  %p4982_p2 = scmp.lt.s32.totalorder %s145_s7, %s145_s7 }
  0x34   :  { %p4978_p1 = scmp.ne.s32.totalorder %s145_s7, %s4977_s30  ;;  %p4983_p3 = scmp.lt.s32.totalorder %s4977_s30, %s4977_s30 }
  0x36   :  { %p4984_p4 = por %p4983_p3, %p4982_p2 }
  0x38   :  { %p4985_p5 = pnand %p4984_p4, %p4978_p1 }
  0x3a   :  { %4988 = shalt.err (!%p4985_p5)
}
  0x3b   :  { %150 = dma.hbm_to_vmem [thread:$0]  %s5935_s17, 32, %s145_s7, [#allocation15], %s5948_s4, %s5948_s4, %s5127_s1  }
  0x3c   :  { %s4997_s13 = scalar_lea.vmem %s41_s10, 256  ;;  %p5002_p7 = scmp.lt.s32.totalorder %s41_s10, %s41_s10 }
  0x3d   :  { %p4998_p6 = scmp.ne.s32.totalorder %s41_s10, %s4997_s13  ;;  %p5003_p8 = scmp.lt.s32.totalorder %s4997_s13, %s4997_s13 }
  0x3f   :  { %p5004_p9 = por %p5003_p8, %p5002_p7 }
  0x41   :  { %p5005_p10 = pnand %p5004_p9, %p4998_p6 }
  0x43   :  { %5008 = shalt.err (!%p5005_p10)
}
  0x44   :  { %s5964_s26 = sld [smem:[#allocation24_spill]]  ;;  %s5130_s2 = smov [#allocation7]  }
  0x45   :  { %s78_s29 = sshll.u32 %s5130_s2, 4  ;;  %s5131_s0 = smov [#allocation10]   ;;  %s79_s29 = int_to_ptr.vmem [resolvable:$true] %s78_s29 }
  0x46   :  { %s102_s17 = sshll.u32 %s5131_s0, 4  ;;  %s5017_s7 = scalar_lea.vmem %s79_s29, 32  ;;  %s103_s17 = int_to_ptr.vmem [resolvable:$true] %s102_s17 }
  0x47   :  { %p5018_p11 = scmp.ne.s32.totalorder %s79_s29, %s5017_s7  ;;  %p5022_p12 = scmp.lt.s32.totalorder %s79_s29, %s79_s29 }
  0x48   :  { %p5023_p13 = scmp.lt.s32.totalorder %s5017_s7, %s5017_s7 }
  0x4a   :  { %46 = dma.hbm_to_vmem [thread:$0]  %s5964_s26, 256, %s41_s10, [#allocation3], %s5122_s28, %s5122_s28, %s5950_s6  }
  0x4b   :  { %p5024_p0 = por %p5023_p13, %p5022_p12 }
  0x4d   :  { %p5025_p1 = pnand %p5024_p0, %p5018_p11 }
  0x4f   :  { %5028 = shalt.err (!%p5025_p1)
}
  0x50   :  { %84 = dma.hbm_to_vmem [thread:$0]  %s5927_s9, 32, %s79_s29, [#allocation6], %s5948_s4, %s5948_s4, %s5127_s1  }
  0x51   :  { %s5037_s10 = scalar_lea.vmem %s103_s17, 32  ;;  %p5042_p3 = scmp.lt.s32.totalorder %s103_s17, %s103_s17 }
  0x52   :  { %p5038_p2 = scmp.ne.s32.totalorder %s103_s17, %s5037_s10  ;;  %p5043_p4 = scmp.lt.s32.totalorder %s5037_s10, %s5037_s10 }
  0x54   :  { %p5044_p5 = por %p5043_p4, %p5042_p3 }
  0x56   :  { %p5045_p6 = pnand %p5044_p5, %p5038_p2 }
  0x58   :  { %5048 = shalt.err (!%p5045_p6)
}
  0x59   :  { %108 = dma.hbm_to_vmem [thread:$0]  %s5929_s11, 32, %s103_s17, [#allocation9], %s5948_s4, %s5948_s4, %s5127_s1  }
  0x5a   :  { %s5132_s13 = smov [#allocation13]   ;;  %s5133_s27 = smov [#allocation16]  }
  0x5b   :  { %s130_s25 = sshll.u32 %s5132_s13, 4  ;;  %s156_s9 = sshll.u32 %s5133_s27, 4  ;;  %s131_s25 = int_to_ptr.vmem [resolvable:$true] %s130_s25  ;;  %s157_s9 = int_to_ptr.vmem [resolvable:$true] %s156_s9 }
  0x5c   :  { %s5057_s26 = scalar_lea.vmem %s131_s25, 32  ;;  %p5062_p8 = scmp.lt.s32.totalorder %s131_s25, %s131_s25 }
  0x5d   :  { %p5058_p7 = scmp.ne.s32.totalorder %s131_s25, %s5057_s26  ;;  %p5063_p9 = scmp.lt.s32.totalorder %s5057_s26, %s5057_s26 }
  0x5f   :  { %p5064_p10 = por %p5063_p9, %p5062_p8 }
  0x61   :  { %p5065_p11 = pnand %p5064_p10, %p5058_p7 }
  0x63   :  { %5068 = shalt.err (!%p5065_p11)
}
  0x64   :  { %136 = dma.hbm_to_vmem [thread:$0]  %s5933_s15, 32, %s131_s25, [#allocation12], %s5948_s4, %s5948_s4, %s5127_s1  }
  0x65   :  { %s5077_s11 = scalar_lea.vmem %s157_s9, 512  ;;  %p5082_p13 = scmp.lt.s32.totalorder %s157_s9, %s157_s9 }
  0x66   :  { %p5078_p12 = scmp.ne.s32.totalorder %s157_s9, %s5077_s11  ;;  %p5083_p0 = scmp.lt.s32.totalorder %s5077_s11, %s5077_s11 }
  0x68   :  { %p5084_p1 = por %p5083_p0, %p5082_p13 }
  0x6a   :  { %p5085_p2 = pnand %p5084_p1, %p5078_p12 }
  0x6c   :  { %5088 = shalt.err (!%p5085_p2)
}
  0x6d   :  { %162 = dma.hbm_to_vmem [thread:$0]  %s5936_s18, 512, %s157_s9, [#allocation15], %s5122_s28, %s5122_s28, %s5950_s6  }
  0x6e   :  { %5109 = dma.done.wait [#allocation3], 256  }
  0x6f   :  { %5110 = vsyncadd [#allocation3], 4294967040 }
  0x70   :  { %5111 = dma.done.wait [#allocation6], 288  }
  0x71   :  { %5112 = vsyncadd [#allocation6], 4294967008 }
  0x72   :  { %5113 = dma.done.wait [#allocation9], 64  }
  0x73   :  { %5114 = vsyncadd [#allocation9], 4294967232 }
  0x74   :  { %5115 = dma.done.wait [#allocation12], 64  }
  0x75   :  { %5116 = vsyncadd [#allocation12], 4294967232 }
  0x76   :  { %5117 = dma.done.wait [#allocation15], 544  }
  0x77   :  { %5118 = vsyncadd [#allocation15], 4294966752  ;;  %vm211_vm0 = vcmask 130048   ;;  %v203_v0 = vld [vmem:[#allocation5 + $0x8] sm:$0xff]  ;;  %v202_v1 = vld [vmem:[#allocation5] sm:$0xff]  ;;  %s5965_s28 = sld [smem:[#allocation30_spill]] }
  0x78   :  { %v200_v2 = vld [vmem:[#allocation2] sm:$0xff]  ;;  %4501 = vmatprep.subr.mxu0 %v203_v0  ;;  %v201_v3 = vld [vmem:[#allocation2 + $0x8] sm:$0xff]  ;;  %s5966_s25 = sld [smem:[#allocation27_spill]]  ;;  %vm339_vm1 = vcmask 261120   ;;  %v5134_v16 = vmov 0.0   ;;  %vm5135_vm2 = vmmov 0  }
  0x79   :  { %4505 = vmatprep.mubr.msk.f32.mxu0 %vm211_vm0, %v200_v2  ;;  %4502 = vmatpush3.msra.mxu0 %v203_v0  ;;  %s5967_s26 = sld [smem:[#allocation25_spill]]  ;;  %v5136_v19 = vmov 0   ;;  %s5137_s7 = smov 96   ;;  %vm424_vm3 = vcmask 64512   ;;  %vm1784_vm6 = vcmask 195584   ;;  %vm2035_vm7 = vcmask 523264  }
  0x7a   :  { %4503 = vmatprep.subr.mxu0 %v202_v1  ;;  %s5968_s11 = sld [smem:[#allocation28_spill]]  ;;  %4823 = vset.pattern.permute.xlu1 %v5136_v19  ;;  %s5138_s13 = smov 64   ;;  %vm4035_vm8 = vcmask 1041409   ;;  %vm4109_vm9 = vcmask 254976   ;;  %vm4233_vm10 = vcmask 9216  }
  0x7b   :  { %4504 = vmatpush3.msra.mxu0 %v202_v1  ;;  %4824 = vset.pattern.permute.xlu0 %v5136_v19  ;;  %s5969_s15 = sld [smem:[#allocation31_spill]]  ;;  %s5140_s27 = smov 120  }
  0x7c   :  { %4506 = vmatmul.mubr.msk.f32.vlgmr.msra.gmra.mxu0 %vm211_vm0, %v201_v3  ;;  %4519 = vmatprep.subr.mxu0 %v5134_v16  ;;  %s5970_s10 = sld [smem:[#allocation29_spill]]  ;;  %s5141_s9 = smov 56  }
  0x7d   :  { %v331_v4 = vld [vmem:[%s5965_s28 + $0x18] sm:$0xff]  ;;  %v330_v5 = vld [vmem:[%s5965_s28 + $0x10] sm:$0xff]  ;;  %v329_v6 = vld [vmem:[%s5965_s28 + $0x8] sm:$0xff]  ;;  %4521 = vmatprep.mubr.msk.f32.mxu0 %vm5135_vm2, %v5134_v16  ;;  %s5143_s2 = smov 112   ;;  %s5144_s29 = smov 48  }
  0x7e   :  { %4508 = vmatprep.subr.mxu1 %v331_v4  ;;  %v328_v7 = vld [vmem:[%s5965_s28] sm:$0xff]  ;;  %s5146_s0 = smov 104   ;;  %s5147_s17 = smov 40  }
  0x7f   :  { %4509 = vmatpush3.msra.mxu1 %v331_v4  ;;  %v4254_v8 = vld [vmem:[%s5966_s25] ss:$0 sm:$0xff]  ;;  %s5139_s25 = smov 88   ;;  %s5971_s3 = sld [smem:[#allocation32_spill]] }
  0x80   :  { %4510 = vmatprep.subr.mxu1 %v330_v5  ;;  %v293_v12 = vld [vmem:[%s5967_s26] sm:$0xff]  ;;  %v297_v22 = vld [vmem:[%s5968_s11 + $0x8] sm:$0xff]  ;;  %s5142_s26 = smov 80   ;;  %s5952_s18 = smov 24  }
  0x81   :  { %4511 = vmatpush3.msra.mxu1 %v330_v5  ;;  %v296_v17 = vld [vmem:[%s5968_s11] sm:$0xff]  ;;  %s5145_s11 = smov 72  }
  0x82   :  { %4512 = vmatprep.subr.mxu1 %v329_v6  ;;  %302 = vperm.xlu1 %4823, %v296_v17   ;;  %v4259_v20 = vld [vmem:[%s5969_s15] ss:$0 sm:$0xff]  ;;  %v4258_v30 = vld [vmem:[%s5970_s10 + $0x1] ss:$0 sm:$0xff] }
  0x83   :  { %4513 = vmatpush3.msra.mxu1 %v329_v6  ;;  %v4257_v27 = vld [vmem:[%s5970_s10] ss:$0 sm:$0xff] }
  0x84   :  { %4514 = vmatprep.subr.mxu1 %v328_v7 }
  0x85   :  { %4515 = vmatpush3.msra.mxu1 %v328_v7 }
  0x86   :  { %4529 = vmatprep.subr.mxu1 %v5134_v16  ;;  %307 = vperm.xlu1 %4823, %v297_v22  }
  0xfd   :  { %v303_v28 = vpop.permute.xlu1 %302 }
  0xfe   :  { %v322_v29 = vmax.f32 %v303_v28, %v4257_v27 }
 0x100   :  { %vm324_vm4 = vcmp.gt.f32.partialorder %v322_v29, 0.5 }
 0x101   :  { %v308_v31 = vpop.permute.xlu1 %307  ;;  %v5399_v33 = vsel %vm324_vm4, -1e+09, %v5134_v16 }
 0x102   :  { %v323_v32 = vmax.f32 %v308_v31, %v4258_v30 }
 0x104   :  { %vm325_vm5 = vcmp.gt.f32.partialorder %v323_v32, 0.5 }
 0x105   :  { %v5404_v41 = vsel %vm325_vm5, -1e+09, %v5134_v16 }
 0x13c   :  { %v4507_v9 = vpop.f32.mrf.mxu0 }
 0x13d   :  { %v290_v10 = vadd.f32 %v4507_v9, %v4254_v8 }
 0x13e   :  { %v284_v11 = vpop.f32.mrf.mxu0 }
 0x13f   :  { %v285_v13 = vadd.f32 %v4254_v8, %v284_v11  ;;  %v5351_v15 = vadd.f32 %v293_v12, %v290_v10 }
 0x141   :  { %v5349_v14 = vadd.f32 %v293_v12, %v285_v13 }
 0x143   :  { %4516 = vmatprep.mubr.msk.f32.mxu1 %vm339_vm1, %v5349_v14 }
 0x144   :  { %4517 = vmatmul.mubr.msk.f32.vlgmr.msra.gmra.mxu1 %vm339_vm1, %v5351_v15 }
 0x145   :  { %4531 = vmatprep.mubr.msk.f32.mxu1 %vm5135_vm2, %v5134_v16 }
 0x204   :  { %v4518_v18 = vpop.f32.mrf.mxu1 }
 0x205   :  { %v5376_v24 = vadd.f32 %v4518_v18, %v4259_v20 }
 0x206   :  { %v412_v21 = vpop.f32.mrf.mxu1 }
 0x207   :  { %v5372_v23 = vadd.f32 %v4259_v20, %v412_v21 }
 0x209   :  { %422 = vrot.lane.b32.xlu0 %v5372_v23, %s5137_s7 }
 0x20d   :  { %500 = vrot.lane.b32.xlu0 %v5376_v24, %s5137_s7 }
 0x27b   :  { %v423_v25 = vpop.permute.xlu0 %422 }
 0x27c   :  { %4520 = vmatpush3.xpose.msk.msra.mxu0 %vm424_vm3, %v423_v25 }
 0x27d   :  { %4524 = vmatprep.subr.mxu0 %v5134_v16 }
 0x27f   :  { %4522 = vmatmul.mubr.msk.f32.vlgmr.msra.gmra.mxu0 %vm424_vm3, %v5372_v23  ;;  %v501_v26 = vpop.permute.xlu0 %500 }
 0x280   :  { %4525 = vmatpush3.xpose.msk.msra.mxu0 %vm424_vm3, %v501_v26  ;;  %4526 = vmatprep.mubr.msk.f32.mxu0 %vm5135_vm2, %v5134_v16 }
 0x281   :  { %4534 = vmatprep.subr.mxu0 %v5134_v16 }
 0x283   :  { %4527 = vmatmul.mubr.msk.f32.vlgmr.msra.gmra.mxu0 %vm424_vm3, %v5376_v24 }
 0x284   :  { %4536 = vmatprep.mubr.msk.f32.mxu0 %vm5135_vm2, %v5134_v16 }
 0x33f   :  { %v495_v34 = vpop.f32.mrf.mxu0 }
 0x340   :  { %v576_v35 = vmul.f32 0.35355338, %v495_v34 }
 0x341   :  { %v4523_v36 = vpop.f32.mrf.mxu0 }
 0x342   :  { %v578_v37 = vadd.f32 %v576_v35, %v5399_v33 }
 0x343   :  { %v572_v38 = vpop.f32.mrf.mxu0 }
 0x344   :  { %v577_v39 = vmul.f32 0.35355338, %v572_v38  ;;  %v580_v40 = vsel %vm424_vm3, %v578_v37, -inf }
 0x345   :  { %581 = vmax.xlane.f32.xlu0 %v580_v40  ;;  %v4528_v42 = vpop.f32.mrf.mxu0 }
 0x346   :  { %v579_v43 = vadd.f32 %v577_v39, %v5404_v41 }
 0x348   :  { %v583_v44 = vsel %vm424_vm3, %v579_v43, -inf }
 0x349   :  { %584 = vmax.xlane.f32.xlu1 %v583_v44 }
 0x35a   :  { %602 = vrot.lane.b32.xlu1 %v5372_v23, %s5138_s13 }
 0x35b   :  { %678 = vrot.lane.b32.xlu0 %v5376_v24, %s5138_s13 }
 0x35e   :  { %756 = vrot.lane.b32.xlu1 %v5372_v23, %s5139_s25 }
 0x362   :  { %834 = vrot.lane.b32.xlu1 %v5376_v24, %s5139_s25 }
 0x366   :  { %832 = vrot.lane.b32.xlu1 %v5376_v24, %s5140_s27 }
 0x3ce   :  { %v582_v45 = vpop.xlane.xlu0 %581 }
 0x3cf   :  { %v586_v46 = vsub.f32 %v578_v37, %v582_v45 }
 0x3d1   :  { %v588_v47 = vmul.f32 1.442695, %v586_v46 }
 0x3d2   :  { %v585_v48 = vpop.xlane.xlu1 %584  ;;  %v679_v49 = vpop.permute.xlu0 %678 }
 0x3d3   :  { %4825 = vpow2.f32 %v588_v47  ;;  %v587_v50 = vsub.f32 %v579_v43, %v585_v48  ;;  %4535 = vmatpush3.msra.mxu0 %v679_v49 }
 0x3d4   :  { %4544 = vmatprep.subr.mxu0 %v5134_v16 }
 0x3d5   :  { %v590_v51 = vmul.f32 1.442695, %v587_v50 }
 0x3d6   :  { %v603_v52 = vpop.permute.xlu1 %602 }
 0x3d7   :  { %4827 = vpow2.f32 %v590_v51  ;;  %4530 = vmatpush3.msra.mxu1 %v603_v52 }
 0x3d8   :  { %4539 = vmatprep.subr.mxu1 %v5134_v16 }
 0x3da   :  { %v757_v59 = vpop.permute.xlu1 %756 }
 0x3de   :  { %v835_v63 = vpop.permute.xlu1 %834 }
 0x3e0   :  { %v4826_v53 = vpop.eup %4825 }
 0x3e1   :  { %v592_v54 = vsel %vm424_vm3, %v4826_v53, 0.0 }
 0x3e2   :  { %593 = vadd.xlane.f32.xlu0 %v592_v54  ;;  %v833_v2 = vpop.permute.xlu1 %832 }
 0x3e4   :  { %v4828_v55 = vpop.eup %4827 }
 0x3e5   :  { %v595_v56 = vsel %vm424_vm3, %v4828_v55, 0.0 }
 0x3e6   :  { %596 = vadd.xlane.f32.xlu0 %v595_v56 }
 0x3fc   :  { %754 = vrot.lane.b32.xlu0 %v5372_v23, %s5140_s27 }
 0x46b   :  { %v594_v57 = vpop.xlane.xlu0 %593 }
 0x46c   :  { %4829 = vrcp.f32 %v594_v57 }
 0x46f   :  { %v597_v58 = vpop.xlane.xlu0 %596 }
 0x470   :  { %4831 = vrcp.f32 %v597_v58 }
 0x473   :  { %v755_v1 = vpop.permute.xlu0 %754 }
 0x479   :  { %v4830_v60 = vpop.eup %4829 }
 0x47a   :  { %v599_v61 = vmul.f32 %v4830_v60, %v4826_v53 }
 0x47c   :  { %4532 = vmatmul.mubr.msk.f32.vlgmr.msra.gmra.mxu1 %vm424_vm3, %v599_v61 }
 0x47d   :  { %v4832_v62 = vpop.eup %4831  ;;  %4540 = vmatpush3.xpose.msk.msra.mxu1 %vm424_vm3, %v757_v59  ;;  %4541 = vmatprep.mubr.msk.f32.mxu1 %vm5135_vm2, %v5134_v16 }
 0x47e   :  { %v601_v0 = vmul.f32 %v4832_v62, %v4828_v55  ;;  %4549 = vmatprep.subr.mxu1 %v5134_v16 }
 0x480   :  { %4537 = vmatmul.mubr.msk.f32.vlgmr.msra.gmra.mxu0 %vm424_vm3, %v601_v0  ;;  %4542 = vmatmul.mubr.msk.f32.vlgmr.msra.gmra.mxu1 %vm424_vm3, %v755_v1 }
 0x481   :  { %4545 = vmatpush3.xpose.msk.msra.mxu0 %vm424_vm3, %v835_v63  ;;  %4546 = vmatprep.mubr.msk.f32.mxu0 %vm5135_vm2, %v5134_v16 }
 0x482   :  { %4554 = vmatprep.subr.mxu0 %v5134_v16  ;;  %4551 = vmatprep.mubr.msk.f32.mxu1 %vm5135_vm2, %v5134_v16 }
 0x484   :  { %4547 = vmatmul.mubr.msk.f32.vlgmr.msra.gmra.mxu0 %vm424_vm3, %v833_v2 }
 0x485   :  { %4556 = vmatprep.mubr.msk.f32.mxu0 %vm5135_vm2, %v5134_v16 }
 0x53c   :  { %v5440_v3 = vpop.f32.mrf.mxu1 }
 0x53e   :  { %v4533_v4 = vpop.f32.mrf.mxu1 }
 0x540   :  { %v5442_v5 = vpop.f32.mrf.mxu0  ;;  %v828_v6 = vpop.f32.mrf.mxu1 }
 0x541   :  { %v910_v7 = vmul.f32 0.35355338, %v828_v6 }
 0x542   :  { %v4538_v8 = vpop.f32.mrf.mxu0  ;;  %v4543_v9 = vpop.f32.mrf.mxu1 }
 0x543   :  { %v912_v10 = vadd.f32 %v910_v7, %v5399_v33 }
 0x544   :  { %v906_v11 = vpop.f32.mrf.mxu0 }
 0x545   :  { %v911_v12 = vmul.f32 0.35355338, %v906_v11  ;;  %v914_v13 = vsel %vm424_vm3, %v912_v10, -inf }
 0x546   :  { %v4548_v17 = vpop.f32.mrf.mxu0  ;;  %915 = vmax.xlane.f32.xlu0 %v914_v13 }
 0x547   :  { %v913_v18 = vadd.f32 %v911_v12, %v5404_v41 }
 0x549   :  { %v917_v19 = vsel %vm424_vm3, %v913_v18, -inf }
 0x54a   :  { %918 = vmax.xlane.f32.xlu1 %v917_v19 }
 0x55b   :  { %936 = vrot.lane.b32.xlu1 %v5372_v23, %s5141_s9 }
 0x55c   :  { %1012 = vrot.lane.b32.xlu0 %v5376_v24, %s5141_s9 }
 0x55f   :  { %1090 = vrot.lane.b32.xlu1 %v5372_v23, %s5142_s26 }
 0x563   :  { %1168 = vrot.lane.b32.xlu1 %v5376_v24, %s5142_s26 }
 0x567   :  { %1166 = vrot.lane.b32.xlu1 %v5376_v24, %s5143_s2 }
 0x5cf   :  { %v916_v20 = vpop.xlane.xlu0 %915 }
 0x5d0   :  { %v920_v21 = vsub.f32 %v912_v10, %v916_v20 }
 0x5d2   :  { %v922_v22 = vmul.f32 1.442695, %v920_v21 }
 0x5d3   :  { %v919_v25 = vpop.xlane.xlu1 %918  ;;  %v1013_v26 = vpop.permute.xlu0 %1012 }
 0x5d4   :  { %4833 = vpow2.f32 %v922_v22  ;;  %v921_v27 = vsub.f32 %v913_v18, %v919_v25  ;;  %4555 = vmatpush3.msra.mxu0 %v1013_v26 }
 0x5d5   :  { %4564 = vmatprep.subr.mxu0 %v5134_v16 }
 0x5d6   :  { %v924_v28 = vmul.f32 1.442695, %v921_v27 }
 0x5d7   :  { %v937_v29 = vpop.permute.xlu1 %936 }
 0x5d8   :  { %4835 = vpow2.f32 %v924_v28  ;;  %4550 = vmatpush3.msra.mxu1 %v937_v29 }
 0x5d9   :  { %4559 = vmatprep.subr.mxu1 %v5134_v16 }
 0x5db   :  { %v1091_v37 = vpop.permute.xlu1 %1090 }
 0x5df   :  { %v1169_v42 = vpop.permute.xlu1 %1168 }
 0x5e1   :  { %v4834_v30 = vpop.eup %4833 }
 0x5e2   :  { %v926_v31 = vsel %vm424_vm3, %v4834_v30, 0.0 }
 0x5e3   :  { %927 = vadd.xlane.f32.xlu0 %v926_v31  ;;  %v1167_v45 = vpop.permute.xlu1 %1166 }
 0x5e5   :  { %v4836_v32 = vpop.eup %4835 }
 0x5e6   :  { %v929_v34 = vsel %vm424_vm3, %v4836_v32, 0.0 }
 0x5e7   :  { %930 = vadd.xlane.f32.xlu0 %v929_v34 }
 0x5fd   :  { %1088 = vrot.lane.b32.xlu0 %v5372_v23, %s5143_s2 }
 0x66c   :  { %v928_v35 = vpop.xlane.xlu0 %927 }
 0x66d   :  { %4837 = vrcp.f32 %v928_v35 }
 0x670   :  { %v931_v36 = vpop.xlane.xlu0 %930 }
 0x671   :  { %4839 = vrcp.f32 %v931_v36 }
 0x674   :  { %v1089_v44 = vpop.permute.xlu0 %1088 }
 0x67a   :  { %v4838_v38 = vpop.eup %4837 }
 0x67b   :  { %v933_v39 = vmul.f32 %v4838_v38, %v4834_v30 }
 0x67d   :  { %4552 = vmatmul.mubr.msk.f32.vlgmr.msra.gmra.mxu1 %vm424_vm3, %v933_v39 }
 0x67e   :  { %v4840_v40 = vpop.eup %4839  ;;  %4560 = vmatpush3.xpose.msk.msra.mxu1 %vm424_vm3, %v1091_v37  ;;  %4561 = vmatprep.mubr.msk.f32.mxu1 %vm5135_vm2, %v5134_v16 }
 0x67f   :  { %v935_v43 = vmul.f32 %v4840_v40, %v4836_v32  ;;  %4569 = vmatprep.subr.mxu1 %v5134_v16 }
 0x681   :  { %4557 = vmatmul.mubr.msk.f32.vlgmr.msra.gmra.mxu0 %vm424_vm3, %v935_v43  ;;  %4562 = vmatmul.mubr.msk.f32.vlgmr.msra.gmra.mxu1 %vm424_vm3, %v1089_v44 }
 0x682   :  { %4565 = vmatpush3.xpose.msk.msra.mxu0 %vm424_vm3, %v1169_v42  ;;  %4566 = vmatprep.mubr.msk.f32.mxu0 %vm5135_vm2, %v5134_v16 }
 0x683   :  { %4574 = vmatprep.subr.mxu0 %v5134_v16  ;;  %4571 = vmatprep.mubr.msk.f32.mxu1 %vm5135_vm2, %v5134_v16 }
 0x685   :  { %4567 = vmatmul.mubr.msk.f32.vlgmr.msra.gmra.mxu0 %vm424_vm3, %v1167_v45 }
 0x686   :  { %4576 = vmatprep.mubr.msk.f32.mxu0 %vm5135_vm2, %v5134_v16 }
 0x73d   :  { %v5480_v46 = vpop.f32.mrf.mxu1 }
 0x73f   :  { %v4553_v47 = vpop.f32.mrf.mxu1 }
 0x741   :  { %v5482_v48 = vpop.f32.mrf.mxu0  ;;  %v1162_v49 = vpop.f32.mrf.mxu1 }
 0x742   :  { %v1244_v50 = vmul.f32 0.35355338, %v1162_v49 }
 0x743   :  { %v4558_v51 = vpop.f32.mrf.mxu0  ;;  %v4563_v52 = vpop.f32.mrf.mxu1 }
 0x744   :  { %v1246_v53 = vadd.f32 %v1244_v50, %v5399_v33 }
 0x745   :  { %v1240_v54 = vpop.f32.mrf.mxu0 }
 0x746   :  { %v1245_v55 = vmul.f32 0.35355338, %v1240_v54  ;;  %v1248_v56 = vsel %vm424_vm3, %v1246_v53, -inf }
 0x747   :  { %v4568_v57 = vpop.f32.mrf.mxu0  ;;  %1249 = vmax.xlane.f32.xlu0 %v1248_v56 }
 0x748   :  { %v1247_v58 = vadd.f32 %v1245_v55, %v5404_v41 }
 0x74a   :  { %v1251_v59 = vsel %vm424_vm3, %v1247_v58, -inf }
 0x74b   :  { %1252 = vmax.xlane.f32.xlu1 %v1251_v59  ;;  %v1788_v59 = vld [vmem:[%s5971_s3 + $0x8] sm:$0xff] }
 0x75c   :  { %1270 = vrot.lane.b32.xlu1 %v5372_v23, %s5144_s29 }
 0x75d   :  { %1346 = vrot.lane.b32.xlu0 %v5376_v24, %s5144_s29 }
 0x760   :  { %1424 = vrot.lane.b32.xlu1 %v5372_v23, %s5145_s11 }
 0x764   :  { %1502 = vrot.lane.b32.xlu1 %v5376_v24, %s5145_s11 }
 0x768   :  { %1500 = vrot.lane.b32.xlu1 %v5376_v24, %s5146_s0 }
 0x7d0   :  { %v1250_v60 = vpop.xlane.xlu0 %1249 }
 0x7d1   :  { %v1254_v61 = vsub.f32 %v1246_v53, %v1250_v60  ;;  %v1787_v60 = vld [vmem:[%s5971_s3] sm:$0xff] }
 0x7d3   :  { %v1256_v62 = vmul.f32 1.442695, %v1254_v61 }
 0x7d4   :  { %v1253_v63 = vpop.xlane.xlu1 %1252  ;;  %v1347_v0 = vpop.permute.xlu0 %1346 }
 0x7d5   :  { %4841 = vpow2.f32 %v1256_v62  ;;  %v1255_v1 = vsub.f32 %v1247_v58, %v1253_v63  ;;  %4575 = vmatpush3.msra.mxu0 %v1347_v0  ;;  %v1789_v58 = vld [vmem:[%s5971_s3 + $0x10] sm:$0xff] }
 0x7d6   :  { %4584 = vmatprep.subr.mxu0 %v5134_v16 }
 0x7d7   :  { %v1258_v2 = vmul.f32 1.442695, %v1255_v1 }
 0x7d8   :  { %v1271_v4 = vpop.permute.xlu1 %1270 }
 0x7d9   :  { %4843 = vpow2.f32 %v1258_v2  ;;  %4570 = vmatpush3.msra.mxu1 %v1271_v4 }
 0x7da   :  { %4579 = vmatprep.subr.mxu1 %v5134_v16 }
 0x7dc   :  { %v1425_v12 = vpop.permute.xlu1 %1424 }
 0x7e0   :  { %v1503_v19 = vpop.permute.xlu1 %1502 }
 0x7e2   :  { %v4842_v6 = vpop.eup %4841 }
 0x7e3   :  { %v1260_v7 = vsel %vm424_vm3, %v4842_v6, 0.0 }
 0x7e4   :  { %1261 = vadd.xlane.f32.xlu0 %v1260_v7  ;;  %v1501_v22 = vpop.permute.xlu1 %1500 }
 0x7e6   :  { %v4844_v8 = vpop.eup %4843 }
 0x7e7   :  { %v1263_v9 = vsel %vm424_vm3, %v4844_v8, 0.0 }
 0x7e8   :  { %1264 = vadd.xlane.f32.xlu0 %v1263_v9 }
 0x7fe   :  { %1422 = vrot.lane.b32.xlu0 %v5372_v23, %s5146_s0 }
 0x86d   :  { %v1262_v10 = vpop.xlane.xlu0 %1261 }
 0x86e   :  { %4845 = vrcp.f32 %v1262_v10 }
 0x871   :  { %v1265_v11 = vpop.xlane.xlu0 %1264 }
 0x872   :  { %4847 = vrcp.f32 %v1265_v11 }
 0x875   :  { %v1423_v21 = vpop.permute.xlu0 %1422 }
 0x87b   :  { %v4846_v13 = vpop.eup %4845 }
 0x87c   :  { %v1267_v17 = vmul.f32 %v4846_v13, %v4842_v6 }
 0x87e   :  { %4572 = vmatmul.mubr.msk.f32.vlgmr.msra.gmra.mxu1 %vm424_vm3, %v1267_v17 }
 0x87f   :  { %v4848_v18 = vpop.eup %4847  ;;  %4580 = vmatpush3.xpose.msk.msra.mxu1 %vm424_vm3, %v1425_v12  ;;  %4581 = vmatprep.mubr.msk.f32.mxu1 %vm5135_vm2, %v5134_v16 }
 0x880   :  { %v1269_v20 = vmul.f32 %v4848_v18, %v4844_v8  ;;  %4589 = vmatprep.subr.mxu1 %v5134_v16  ;;  %v4286_v18 = vld [vmem:[#allocation7] ss:$0 sm:$0xff] }
 0x882   :  { %4577 = vmatmul.mubr.msk.f32.vlgmr.msra.gmra.mxu0 %vm424_vm3, %v1269_v20  ;;  %4582 = vmatmul.mubr.msk.f32.vlgmr.msra.gmra.mxu1 %vm424_vm3, %v1423_v21 }
 0x883   :  { %4585 = vmatpush3.xpose.msk.msra.mxu0 %vm424_vm3, %v1503_v19  ;;  %4586 = vmatprep.mubr.msk.f32.mxu0 %vm5135_vm2, %v5134_v16 }
 0x884   :  { %4594 = vmatprep.subr.mxu0 %v5134_v16  ;;  %4591 = vmatprep.mubr.msk.f32.mxu1 %vm5135_vm2, %v5134_v16 }
 0x886   :  { %4587 = vmatmul.mubr.msk.f32.vlgmr.msra.gmra.mxu0 %vm424_vm3, %v1501_v22 }
 0x887   :  { %4596 = vmatprep.mubr.msk.f32.mxu0 %vm5135_vm2, %v5134_v16 }
 0x93e   :  { %v1342_v25 = vpop.f32.mrf.mxu1 }
 0x940   :  { %v4573_v26 = vpop.f32.mrf.mxu1 }
 0x942   :  { %v1418_v27 = vpop.f32.mrf.mxu0  ;;  %v1496_v28 = vpop.f32.mrf.mxu1 }
 0x943   :  { %v1578_v29 = vmul.f32 0.35355338, %v1496_v28 }
 0x944   :  { %v4578_v30 = vpop.f32.mrf.mxu0  ;;  %v4583_v31 = vpop.f32.mrf.mxu1 }
 0x945   :  { %v1580_v32 = vadd.f32 %v1578_v29, %v5399_v33 }
 0x946   :  { %v1574_v34 = vpop.f32.mrf.mxu0 }
 0x947   :  { %v1579_v35 = vmul.f32 0.35355338, %v1574_v34  ;;  %v1582_v36 = vsel %vm424_vm3, %v1580_v32, -inf }
 0x948   :  { %v4588_v37 = vpop.f32.mrf.mxu0  ;;  %1583 = vmax.xlane.f32.xlu0 %v1582_v36 }
 0x949   :  { %v1581_v38 = vadd.f32 %v1579_v35, %v5404_v41  ;;  %v1928_v37 = vld [vmem:[%s5930_s12 + $0x10] sm:$0xff] }
 0x94b   :  { %v1585_v39 = vsel %vm424_vm3, %v1581_v38, -inf }
 0x94c   :  { %1586 = vmax.xlane.f32.xlu1 %v1585_v39  ;;  %v1926_v39 = vld [vmem:[%s5930_s12] sm:$0xff] }
 0x95d   :  { %1604 = vrot.lane.b32.xlu1 %v5372_v23, %s5147_s17 }
 0x961   :  { %1758 = vrot.lane.b32.xlu1 %v5480_v46, %s5950_s6 }
 0x965   :  { %1760 = vrot.lane.b32.xlu1 %v5482_v48, %s5950_s6 }
 0x969   :  { %1768 = vrot.lane.b32.xlu1 %v1418_v27, %s5948_s4 }
 0x9d1   :  { %v1584_v40 = vpop.xlane.xlu0 %1583 }
 0x9d2   :  { %v1588_v42 = vsub.f32 %v1580_v32, %v1584_v40  ;;  %v2027_v40 = vld [vmem:[%s5932_s14 + $0x38] sm:$0xff] }
 0x9d4   :  { %v1590_v43 = vmul.f32 1.442695, %v1588_v42  ;;  %v2026_v42 = vld [vmem:[%s5932_s14 + $0x30] sm:$0xff] }
 0x9d5   :  { %v1587_v44 = vpop.xlane.xlu1 %1586 }
 0x9d6   :  { %4849 = vpow2.f32 %v1590_v43  ;;  %v1589_v45 = vsub.f32 %v1581_v38, %v1587_v44  ;;  %v1927_v38 = vld [vmem:[%s5930_s12 + $0x8] sm:$0xff]  ;;  %v2024_v44 = vld [vmem:[%s5932_s14 + $0x20] sm:$0xff] }
 0x9d7   :  { %v2025_v43 = vld [vmem:[%s5932_s14 + $0x28] sm:$0xff] }
 0x9d8   :  { %v1592_v47 = vmul.f32 1.442695, %v1589_v45 }
 0x9d9   :  { %v1605_v49 = vpop.permute.xlu1 %1604 }
 0x9da   :  { %4851 = vpow2.f32 %v1592_v47  ;;  %4590 = vmatpush3.msra.mxu1 %v1605_v49 }
 0x9dd   :  { %v1759_v1 = vpop.permute.xlu1 %1758 }
 0x9de   :  { %v1780_v6 = vsel %vm424_vm3, %v5440_v3, %v1759_v1 }
 0x9e1   :  { %v1761_v2 = vpop.permute.xlu1 %1760 }
 0x9e2   :  { %v1781_v11 = vsel %vm424_vm3, %v5442_v5, %v1761_v2 }
 0x9e3   :  { %v4850_v50 = vpop.eup %4849 }
 0x9e4   :  { %v1594_v23 = vsel %vm424_vm3, %v4850_v50, 0.0 }
 0x9e5   :  { %1595 = vadd.xlane.f32.xlu0 %v1594_v23  ;;  %v1769_v7 = vpop.permute.xlu1 %1768 }
 0x9e6   :  { %v1783_v12 = vsel %vm211_vm0, %v1781_v11, %v1769_v7 }
 0x9e7   :  { %v4852_v46 = vpop.eup %4851 }
 0x9e8   :  { %v1597_v51 = vsel %vm424_vm3, %v4852_v46, 0.0 }
 0x9e9   :  { %1598 = vadd.xlane.f32.xlu0 %v1597_v51 }
 0x9ff   :  { %1680 = vrot.lane.b32.xlu0 %v5376_v24, %s5147_s17  ;;  %v1790_v24 = vld [vmem:[%s5971_s3 + $0x18] sm:$0xff] }
 0xa00   :  { %4599 = vmatprep.subr.mxu1 %v1790_v24 }
 0xa03   :  { %1766 = vrot.lane.b32.xlu0 %v1342_v25, %s5948_s4 }
 0xa6e   :  { %v1596_v48 = vpop.xlane.xlu0 %1595 }
 0xa6f   :  { %4853 = vrcp.f32 %v1596_v48  ;;  %v4289_v48 = vld [vmem:[#allocation8] ss:$0 sm:$0xff] }
 0xa72   :  { %v1599_v52 = vpop.xlane.xlu0 %1598 }
 0xa73   :  { %4855 = vrcp.f32 %v1599_v52 }
 0xa76   :  { %v1681_v53 = vpop.permute.xlu0 %1680 }
 0xa77   :  { %4595 = vmatpush3.msra.mxu0 %v1681_v53  ;;  %v4290_v53 = vld [vmem:[#allocation10] ss:$0 sm:$0xff] }
 0xa7a   :  { %v1767_v4 = vpop.permute.xlu0 %1766 }
 0xa7b   :  { %v1782_v8 = vsel %vm211_vm0, %v1780_v6, %v1767_v4 }
 0xa7c   :  { %v4854_v54 = vpop.eup %4853 }
 0xa7d   :  { %v1601_v55 = vmul.f32 %v4854_v54, %v4850_v50 }
 0xa7f   :  { %4592 = vmatmul.mubr.msk.f32.vlgmr.msra.gmra.mxu1 %vm424_vm3, %v1601_v55 }
 0xa80   :  { %v4856_v56 = vpop.eup %4855  ;;  %4600 = vmatpush3.msra.mxu1 %v1790_v24 }
 0xa81   :  { %v1603_v57 = vmul.f32 %v4856_v56, %v4852_v46  ;;  %4601 = vmatprep.subr.mxu1 %v1789_v58 }
 0xa82   :  { %4602 = vmatpush3.msra.mxu1 %v1789_v58 }
 0xa83   :  { %4597 = vmatmul.mubr.msk.f32.vlgmr.msra.gmra.mxu0 %vm424_vm3, %v1603_v57  ;;  %4603 = vmatprep.subr.mxu1 %v1788_v59 }
 0xa84   :  { %4604 = vmatpush3.msra.mxu1 %v1788_v59  ;;  %v2023_v59 = vld [vmem:[%s5932_s14 + $0x18] sm:$0xff] }
 0xa85   :  { %4605 = vmatprep.subr.mxu1 %v1787_v60 }
 0xa86   :  { %4606 = vmatpush3.msra.mxu1 %v1787_v60  ;;  %v2022_v60 = vld [vmem:[%s5932_s14 + $0x10] sm:$0xff] }
 0xa87   :  { %4621 = vmatprep.subr.mxu1 %v2027_v40 }
 0xb3f   :  { %v1676_v61 = vpop.f32.mrf.mxu1 }
 0xb40   :  { %1774 = vrot.lane.b32.xlu0 %v1676_v61, %s5952_s18  ;;  %v2021_v61 = vld [vmem:[%s5932_s14 + $0x8] sm:$0xff] }
 0xb41   :  { %v4593_v62 = vpop.f32.mrf.mxu1 }
 0xb42   :  { %v2020_v62 = vld [vmem:[%s5932_s14] sm:$0xff] }
 0xb43   :  { %v1752_v63 = vpop.f32.mrf.mxu0 }
 0xb44   :  { %1776 = vrot.lane.b32.xlu1 %v1752_v63, %s5952_s18  ;;  %v4291_v63 = vld [vmem:[#allocation11] ss:$0 sm:$0xff] }
 0xb45   :  { %v4598_v0 = vpop.f32.mrf.mxu0 }
 0xbb2   :  { %v1775_v9 = vpop.permute.xlu0 %1774 }
 0xbb3   :  { %v1785_v10 = vsel %vm1784_vm6, %v1782_v8, %v1775_v9  ;;  %v4294_v8 = vld [vmem:[#allocation13] ss:$0 sm:$0xff] }
 0xbb4   :  { %4607 = vmatprep.mubr.msk.f32.mxu1 %vm339_vm1, %v1785_v10 }
 0xbb6   :  { %v1777_v13 = vpop.permute.xlu1 %1776 }
 0xbb7   :  { %v1786_v17 = vsel %vm1784_vm6, %v1783_v12, %v1777_v13 }
 0xbb8   :  { %4608 = vmatmul.mubr.msk.f32.vlgmr.msra.gmra.mxu1 %vm339_vm1, %v1786_v17 }
 0xbb9   :  { %4622 = vmatpush3.msra.mxu1 %v2027_v40  ;;  %v4297_v40 = vld [vmem:[%s5934_s16] ss:$0 sm:$0xff] }
 0xbba   :  { %4623 = vmatprep.subr.mxu1 %v2026_v42 }
 0xbbb   :  { %4624 = vmatpush3.msra.mxu1 %v2026_v42 }
 0xbbc   :  { %4625 = vmatprep.subr.mxu1 %v2025_v43 }
 0xbbd   :  { %4626 = vmatpush3.msra.mxu1 %v2025_v43 }
 0xbbe   :  { %4627 = vmatprep.subr.mxu1 %v2024_v44 }
 0xbbf   :  { %4628 = vmatpush3.msra.mxu1 %v2024_v44 }
 0xbc0   :  { %4629 = vmatprep.subr.mxu1 %v2023_v59 }
 0xbc1   :  { %4630 = vmatpush3.msra.mxu1 %v2023_v59 }
 0xbc2   :  { %4631 = vmatprep.subr.mxu1 %v2022_v60 }
 0xbc3   :  { %4632 = vmatpush3.msra.mxu1 %v2022_v60 }
 0xbc4   :  { %4633 = vmatprep.subr.mxu1 %v2021_v61 }
 0xbc5   :  { %4634 = vmatpush3.msra.mxu1 %v2021_v61 }
 0xbc6   :  { %4635 = vmatprep.subr.mxu1 %v2020_v62 }
 0xbc7   :  { %4636 = vmatpush3.msra.mxu1 %v2020_v62 }
 0xbc8   :  { %4661 = vmatprep.subr.mxu1 %v5134_v16 }
 0xc78   :  { %v4609_v3 = vpop.f32.mrf.mxu1 }
 0xc79   :  { %v1876_v19 = vadd.f32 %v4609_v3, %v4286_v18 }
 0xc7a   :  { %v1870_v20 = vpop.f32.mrf.mxu1 }
 0xc7b   :  { %v1871_v21 = vadd.f32 %v4286_v18, %v1870_v20  ;;  %v1880_v22 = vadd.f32 %v1876_v19, %v5351_v15 }
 0xc7d   :  { %v1886_v25 = vsel %vm339_vm1, %v1880_v22, 0.0  ;;  %v1879_v26 = vadd.f32 %v1871_v21, %v5349_v14  ;;  %v1929_v14 = vld [vmem:[%s5930_s12 + $0x18] sm:$0xff] }
 0xc7e   :  { %1887 = vadd.xlane.f32.xlu1 %v1886_v25  ;;  %4610 = vmatprep.subr.mxu0 %v1929_v14 }
 0xc7f   :  { %v1883_v5 = vsel %vm339_vm1, %v1879_v26, 0.0  ;;  %4611 = vmatpush3.msra.mxu0 %v1929_v14 }
 0xc80   :  { %1884 = vadd.xlane.f32.xlu0 %v1883_v5  ;;  %4612 = vmatprep.subr.mxu0 %v1928_v37 }
 0xc81   :  { %4613 = vmatpush3.msra.mxu0 %v1928_v37 }
 0xc82   :  { %4614 = vmatprep.subr.mxu0 %v1927_v38 }
 0xc83   :  { %4615 = vmatpush3.msra.mxu0 %v1927_v38 }
 0xc84   :  { %4616 = vmatprep.subr.mxu0 %v1926_v39 }
 0xc85   :  { %4617 = vmatpush3.msra.mxu0 %v1926_v39 }
 0xd07   :  { %v1888_v27 = vpop.xlane.xlu1 %1887 }
 0xd08   :  { %v1891_v28 = vmul.f32 0.03125, %v1888_v27 }
 0xd09   :  { %v1885_v29 = vpop.xlane.xlu0 %1884 }
 0xd0a   :  { %v1890_v30 = vmul.f32 0.03125, %v1885_v29  ;;  %v1893_v31 = vsub.f32 %v1880_v22, %v1891_v28 }
 0xd0c   :  { %v1892_v32 = vsub.f32 %v1879_v26, %v1890_v30  ;;  %v1895_v36 = vmul.f32 %v1893_v31, %v1893_v31  ;;  %v4302_v30 = vld [vmem:[%s5965_s28 + $0x38] sm:$0xff] }
 0xd0d   :  { %4640 = vmatprep.subr.mxu0 %v4302_v30 }
 0xd0e   :  { %v1894_v34 = vmul.f32 %v1892_v32, %v1892_v32  ;;  %v1899_v15 = vsel %vm339_vm1, %v1895_v36, 0.0 }
 0xd10   :  { %v1896_v35 = vsel %vm339_vm1, %v1894_v34, 0.0  ;;  %v4299_v34 = vld [vmem:[%s5965_s28 + $0x20] sm:$0xff] }
 0xd11   :  { %1897 = vadd.xlane.f32.xlu0 %v1896_v35 }
 0xd15   :  { %1900 = vadd.xlane.f32.xlu0 %v1899_v15 }
 0xd9a   :  { %v1898_v45 = vpop.xlane.xlu0 %1897 }
 0xd9b   :  { %v1902_v47 = vmul.f32 0.03125, %v1898_v45 }
 0xd9d   :  { %v1904_v49 = vadd.f32 1e-05, %v1902_v47  ;;  %v4298_v47 = vld [vmem:[#allocation14] ss:$0 sm:$0xff] }
 0xd9e   :  { %v1901_v50 = vpop.xlane.xlu0 %1900 }
 0xd9f   :  { %4857 = vrsqrt.f32 %v1904_v49  ;;  %v1903_v23 = vmul.f32 0.03125, %v1901_v50 }
 0xda1   :  { %v1905_v46 = vadd.f32 1e-05, %v1903_v23 }
 0xda3   :  { %4859 = vrsqrt.f32 %v1905_v46  ;;  %v4304_v46 = vld [vmem:[%s5969_s15 + $0x1] ss:$0 sm:$0xff]  ;;  %s5972_s15 = smov 8  }
 0xdac   :  { %v4858_v51 = vpop.eup %4857 }
 0xdad   :  { %v1908_v52 = vmul.f32 %v4858_v51, %v1892_v32  ;;  %v4300_v32 = vld [vmem:[%s5965_s28 + $0x28] sm:$0xff] }
 0xdaf   :  { %v1916_v54 = vmul.f32 %v4289_v48, %v1908_v52 }
 0xdb0   :  { %v4860_v55 = vpop.eup %4859 }
 0xdb1   :  { %v1909_v56 = vmul.f32 %v4860_v55, %v1893_v31  ;;  %v1924_v57 = vadd.f32 %v4290_v53, %v1916_v54  ;;  %v4301_v31 = vld [vmem:[%s5965_s28 + $0x30] sm:$0xff] }
 0xdb3   :  { %v1917_v24 = vmul.f32 %v4289_v48, %v1909_v56  ;;  %4618 = vmatprep.mubr.msk.f32.mxu0 %vm339_vm1, %v1924_v57 }
 0xdb5   :  { %v1925_v58 = vadd.f32 %v4290_v53, %v1917_v24 }
 0xdb7   :  { %4619 = vmatmul.mubr.msk.f32.vlgmr.msra.gmra.mxu0 %vm339_vm1, %v1925_v58 }
 0xdb8   :  { %4641 = vmatpush3.msra.mxu0 %v4302_v30 }
 0xdb9   :  { %4642 = vmatprep.subr.mxu0 %v4301_v31 }
 0xdba   :  { %4643 = vmatpush3.msra.mxu0 %v4301_v31 }
 0xdbb   :  { %4644 = vmatprep.subr.mxu0 %v4300_v32 }
 0xdbc   :  { %4645 = vmatpush3.msra.mxu0 %v4300_v32 }
 0xdbd   :  { %4646 = vmatprep.subr.mxu0 %v4299_v34 }
 0xdbe   :  { %4647 = vmatpush3.msra.mxu0 %v4299_v34 }
 0xdbf   :  { %4651 = vmatprep.subr.mxu0 %v5134_v16 }
 0xe77   :  { %v4620_v0 = vpop.f32.mrf.mxu0 }
 0xe78   :  { %v2015_v1 = vadd.f32 %v4620_v0, %v4291_v63 }
 0xe79   :  { %v2009_v2 = vpop.f32.mrf.mxu0 }
 0xe7a   :  { %v2010_v4 = vadd.f32 %v4291_v63, %v2009_v2  ;;  %v2019_v7 = vmax.f32 %v2015_v1, 0.0 }
 0xe7c   :  { %v2018_v6 = vmax.f32 %v2010_v4, 0.0 }
 0xe7e   :  { %4637 = vmatprep.mubr.msk.f32.mxu1 %vm2035_vm7, %v2018_v6 }
 0xe7f   :  { %4638 = vmatmul.mubr.msk.f32.vlgmr.msra.gmra.mxu1 %vm2035_vm7, %v2019_v7 }
 0xe80   :  { %4663 = vmatprep.mubr.msk.f32.mxu1 %vm5135_vm2, %v5134_v16 }
 0xf3f   :  { %v4639_v9 = vpop.f32.mrf.mxu1 }
 0xf40   :  { %v2114_v10 = vadd.f32 %v4639_v9, %v4294_v8 }
 0xf41   :  { %v2108_v11 = vpop.f32.mrf.mxu1 }
 0xf42   :  { %v2109_v12 = vadd.f32 %v4294_v8, %v2108_v11  ;;  %v2118_v13 = vadd.f32 %v2114_v10, %v1925_v58 }
 0xf44   :  { %v2124_v17 = vsel %vm339_vm1, %v2118_v13, 0.0  ;;  %v2117_v18 = vadd.f32 %v2109_v12, %v1924_v57 }
 0xf45   :  { %2125 = vadd.xlane.f32.xlu0 %v2124_v17 }
 0xf46   :  { %v2121_v3 = vsel %vm339_vm1, %v2117_v18, 0.0 }
 0xf47   :  { %2122 = vadd.xlane.f32.xlu1 %v2121_v3 }
 0xfce   :  { %v2126_v19 = vpop.xlane.xlu0 %2125 }
 0xfcf   :  { %v2128_v20 = vmul.f32 0.03125, %v2126_v19 }
 0xfd0   :  { %v2123_v21 = vpop.xlane.xlu1 %2122 }
 0xfd1   :  { %v2130_v22 = vsub.f32 %v2118_v13, %v2128_v20  ;;  %v2127_v25 = vmul.f32 0.03125, %v2123_v21 }
 0xfd3   :  { %v2129_v26 = vsub.f32 %v2117_v18, %v2127_v25  ;;  %v2132_v5 = vmul.f32 %v2130_v22, %v2130_v22 }
 0xfd5   :  { %v2136_v27 = vsel %vm339_vm1, %v2132_v5, 0.0  ;;  %v2131_v28 = vmul.f32 %v2129_v26, %v2129_v26 }
 0xfd6   :  { %2137 = vadd.xlane.f32.xlu0 %v2136_v27 }
 0xfd7   :  { %v2133_v29 = vsel %vm339_vm1, %v2131_v28, 0.0 }
 0xfd8   :  { %2134 = vadd.xlane.f32.xlu1 %v2133_v29 }
0x105f   :  { %v2138_v35 = vpop.xlane.xlu0 %2137 }
0x1060   :  { %v2140_v36 = vmul.f32 0.03125, %v2138_v35 }
0x1061   :  { %v2135_v15 = vpop.xlane.xlu1 %2134 }
0x1062   :  { %v2142_v14 = vadd.f32 1e-05, %v2140_v36  ;;  %v2139_v37 = vmul.f32 0.03125, %v2135_v15 }
0x1064   :  { %4861 = vrsqrt.f32 %v2142_v14  ;;  %v2141_v38 = vadd.f32 1e-05, %v2139_v37 }
0x1066   :  { %4863 = vrsqrt.f32 %v2141_v38 }
0x1071   :  { %v4862_v39 = vpop.eup %4861 }
0x1072   :  { %v2146_v42 = vmul.f32 %v4862_v39, %v2130_v22 }
0x1073   :  { %v4864_v43 = vpop.eup %4863 }
0x1074   :  { %v2145_v44 = vmul.f32 %v4864_v43, %v2129_v26  ;;  %v2154_v45 = vmul.f32 %v4297_v40, %v2146_v42 }
0x1076   :  { %v2153_v49 = vmul.f32 %v4297_v40, %v2145_v44  ;;  %v5633_v23 = vadd.f32 %v4298_v47, %v2154_v45 }
0x1078   :  { %v5631_v50 = vadd.f32 %v4298_v47, %v2153_v49 }
0x107a   :  { %4648 = vmatprep.mubr.msk.f32.mxu0 %vm339_vm1, %v5631_v50 }
0x107b   :  { %4649 = vmatmul.mubr.msk.f32.vlgmr.msra.gmra.mxu0 %vm339_vm1, %v5633_v23 }
0x107c   :  { %4653 = vmatprep.mubr.msk.f32.mxu0 %vm5135_vm2, %v5134_v16 }
0x113b   :  { %v4650_v51 = vpop.f32.mrf.mxu0 }
0x113c   :  { %v5644_v48 = vadd.f32 %v4650_v51, %v4304_v46 }
0x113d   :  { %v2248_v52 = vpop.f32.mrf.mxu0 }
0x113e   :  { %v5646_v53 = vadd.f32 %v4304_v46, %v2248_v52  ;;  %2335 = vrot.lane.b32.xlu0 %v5644_v48, %s5137_s7 }
0x1140   :  { %2258 = vrot.lane.b32.xlu1 %v5646_v53, %s5137_s7  ;;  %s5973_s7 = smov 16  }
0x11b0   :  { %v2336_v55 = vpop.permute.xlu0 %2335 }
0x11b2   :  { %v2259_v54 = vpop.permute.xlu1 %2258 }
0x11b3   :  { %4652 = vmatpush3.xpose.msk.msra.mxu0 %vm424_vm3, %v2259_v54 }
0x11b4   :  { %4656 = vmatprep.subr.mxu0 %v5134_v16 }
0x11b6   :  { %4654 = vmatmul.mubr.msk.f32.vlgmr.msra.gmra.mxu0 %vm424_vm3, %v5646_v53 }
0x11b7   :  { %4657 = vmatpush3.xpose.msk.msra.mxu0 %vm424_vm3, %v2336_v55  ;;  %4658 = vmatprep.mubr.msk.f32.mxu0 %vm5135_vm2, %v5134_v16 }
0x11b8   :  { %4666 = vmatprep.subr.mxu0 %v5134_v16 }
0x11ba   :  { %4659 = vmatmul.mubr.msk.f32.vlgmr.msra.gmra.mxu0 %vm424_vm3, %v5644_v48 }
0x11bb   :  { %4668 = vmatprep.mubr.msk.f32.mxu0 %vm5135_vm2, %v5134_v16 }
0x1276   :  { %v2330_v56 = vpop.f32.mrf.mxu0 }
0x1277   :  { %v2411_v57 = vmul.f32 0.35355338, %v2330_v56 }
0x1278   :  { %v4655_v24 = vpop.f32.mrf.mxu0 }
0x1279   :  { %v2413_v58 = vadd.f32 %v2411_v57, %v5399_v33 }
0x127a   :  { %v2407_v59 = vpop.f32.mrf.mxu0 }
0x127b   :  { %v2412_v60 = vmul.f32 0.35355338, %v2407_v59  ;;  %v2415_v61 = vsel %vm424_vm3, %v2413_v58, -inf }
0x127c   :  { %2416 = vmax.xlane.f32.xlu1 %v2415_v61  ;;  %v4660_v62 = vpop.f32.mrf.mxu0 }
0x127d   :  { %v2414_v63 = vadd.f32 %v2412_v60, %v5404_v41 }
0x127f   :  { %v2418_v0 = vsel %vm424_vm3, %v2414_v63, -inf }
0x1280   :  { %2419 = vmax.xlane.f32.xlu0 %v2418_v0 }
0x128d   :  { %2437 = vrot.lane.b32.xlu1 %v5646_v53, %s5138_s13 }
0x1291   :  { %2591 = vrot.lane.b32.xlu1 %v5646_v53, %s5139_s25 }
0x1295   :  { %2669 = vrot.lane.b32.xlu1 %v5644_v48, %s5139_s25  ;;  %s5149_s25 = smov [#allocation17]  }
0x1296   :  { %2513 = vrot.lane.b32.xlu0 %v5644_v48, %s5138_s13 }
0x1305   :  { %v2417_v1 = vpop.xlane.xlu1 %2416 }
0x1306   :  { %v2421_v2 = vsub.f32 %v2413_v58, %v2417_v1 }
0x1308   :  { %v2423_v4 = vmul.f32 1.442695, %v2421_v2 }
0x1309   :  { %v2438_v6 = vpop.permute.xlu1 %2437  ;;  %v2420_v7 = vpop.xlane.xlu0 %2419 }
0x130a   :  { %4865 = vpow2.f32 %v2423_v4  ;;  %v2422_v8 = vsub.f32 %v2414_v63, %v2420_v7  ;;  %4662 = vmatpush3.msra.mxu1 %v2438_v6 }
0x130b   :  { %4671 = vmatprep.subr.mxu1 %v5134_v16 }
0x130c   :  { %v2425_v9 = vmul.f32 1.442695, %v2422_v8 }
0x130d   :  { %v2514_v10 = vpop.permute.xlu0 %2513  ;;  %v2592_v18 = vpop.permute.xlu1 %2591 }
0x130e   :  { %4867 = vpow2.f32 %v2425_v9  ;;  %4667 = vmatpush3.msra.mxu0 %v2514_v10 }
0x130f   :  { %4676 = vmatprep.subr.mxu0 %v5134_v16 }
0x1311   :  { %v2670_v3 = vpop.permute.xlu1 %2669 }
0x1317   :  { %v4866_v11 = vpop.eup %4865 }
0x1318   :  { %v2427_v12 = vsel %vm424_vm3, %v4866_v11, 0.0 }
0x1319   :  { %2428 = vadd.xlane.f32.xlu1 %v2427_v12 }
0x131b   :  { %v4868_v13 = vpop.eup %4867 }
0x131c   :  { %v2430_v17 = vsel %vm424_vm3, %v4868_v13, 0.0 }
0x131d   :  { %2431 = vadd.xlane.f32.xlu0 %v2430_v17 }
0x132a   :  { %2667 = vrot.lane.b32.xlu1 %v5644_v48, %s5140_s27 }
0x1333   :  { %2589 = vrot.lane.b32.xlu0 %v5646_v53, %s5140_s27  ;;  %s4241_s27 = sshll.u32 %s5149_s25, 4  ;;  %s4242_s27 = int_to_ptr.vmem [resolvable:$true] %s4241_s27 }
0x1334   :  { %p5094_p4 = scmp.lt.s32.totalorder %s4242_s27, %s4242_s27 }
0x13a2   :  { %v2429_v19 = vpop.xlane.xlu1 %2428 }
0x13a3   :  { %4869 = vrcp.f32 %v2429_v19 }
0x13a6   :  { %v2432_v20 = vpop.xlane.xlu0 %2431  ;;  %v2668_v27 = vpop.permute.xlu1 %2667 }
0x13a7   :  { %4871 = vrcp.f32 %v2432_v20 }
0x13aa   :  { %v2590_v5 = vpop.permute.xlu0 %2589 }
0x13b0   :  { %v4870_v21 = vpop.eup %4869 }
0x13b1   :  { %v2434_v22 = vmul.f32 %v4870_v21, %v4866_v11 }
0x13b3   :  { %4664 = vmatmul.mubr.msk.f32.vlgmr.msra.gmra.mxu1 %vm424_vm3, %v2434_v22 }
0x13b4   :  { %v4872_v25 = vpop.eup %4871  ;;  %4672 = vmatpush3.xpose.msk.msra.mxu1 %vm424_vm3, %v2592_v18  ;;  %4673 = vmatprep.mubr.msk.f32.mxu1 %vm5135_vm2, %v5134_v16 }
0x13b5   :  { %v2436_v26 = vmul.f32 %v4872_v25, %v4868_v13  ;;  %4681 = vmatprep.subr.mxu1 %v5134_v16 }
0x13b7   :  { %4669 = vmatmul.mubr.msk.f32.vlgmr.msra.gmra.mxu0 %vm424_vm3, %v2436_v26  ;;  %4674 = vmatmul.mubr.msk.f32.vlgmr.msra.gmra.mxu1 %vm424_vm3, %v2590_v5 }
0x13b8   :  { %4677 = vmatpush3.xpose.msk.msra.mxu0 %vm424_vm3, %v2670_v3  ;;  %4678 = vmatprep.mubr.msk.f32.mxu0 %vm5135_vm2, %v5134_v16 }
0x13b9   :  { %4686 = vmatprep.subr.mxu0 %v5134_v16  ;;  %4683 = vmatprep.mubr.msk.f32.mxu1 %vm5135_vm2, %v5134_v16 }
0x13bb   :  { %4679 = vmatmul.mubr.msk.f32.vlgmr.msra.gmra.mxu0 %vm424_vm3, %v2668_v27 }
0x13bc   :  { %4688 = vmatprep.mubr.msk.f32.mxu0 %vm5135_vm2, %v5134_v16 }
0x1473   :  { %v5700_v28 = vpop.f32.mrf.mxu1 }
0x1475   :  { %v4665_v29 = vpop.f32.mrf.mxu1 }
0x1477   :  { %v5702_v30 = vpop.f32.mrf.mxu0  ;;  %v2663_v31 = vpop.f32.mrf.mxu1 }
0x1478   :  { %v2745_v32 = vmul.f32 0.35355338, %v2663_v31 }
0x1479   :  { %v4670_v34 = vpop.f32.mrf.mxu0  ;;  %v4675_v35 = vpop.f32.mrf.mxu1 }
0x147a   :  { %v2747_v36 = vadd.f32 %v2745_v32, %v5399_v33 }
0x147b   :  { %v2741_v15 = vpop.f32.mrf.mxu0 }
0x147c   :  { %v2746_v14 = vmul.f32 0.35355338, %v2741_v15  ;;  %v2749_v37 = vsel %vm424_vm3, %v2747_v36, -inf }
0x147d   :  { %2750 = vmax.xlane.f32.xlu0 %v2749_v37  ;;  %v4680_v38 = vpop.f32.mrf.mxu0 }
0x147e   :  { %v2748_v39 = vadd.f32 %v2746_v14, %v5404_v41 }
0x1480   :  { %v2752_v40 = vsel %vm424_vm3, %v2748_v39, -inf }
0x1481   :  { %2753 = vmax.xlane.f32.xlu1 %v2752_v40 }
0x1492   :  { %2771 = vrot.lane.b32.xlu1 %v5646_v53, %s5141_s9 }
0x1493   :  { %2847 = vrot.lane.b32.xlu0 %v5644_v48, %s5141_s9 }
0x1496   :  { %2925 = vrot.lane.b32.xlu1 %v5646_v53, %s5142_s26 }
0x149a   :  { %3003 = vrot.lane.b32.xlu1 %v5644_v48, %s5142_s26 }
0x149e   :  { %3001 = vrot.lane.b32.xlu1 %v5644_v48, %s5143_s2 }
0x1506   :  { %v2751_v42 = vpop.xlane.xlu0 %2750 }
0x1507   :  { %v2755_v43 = vsub.f32 %v2747_v36, %v2751_v42 }
0x1509   :  { %v2757_v44 = vmul.f32 1.442695, %v2755_v43 }
0x150a   :  { %v2848_v45 = vpop.permute.xlu0 %2847  ;;  %v2754_v47 = vpop.xlane.xlu1 %2753 }
0x150b   :  { %4873 = vpow2.f32 %v2757_v44  ;;  %v2756_v49 = vsub.f32 %v2748_v39, %v2754_v47  ;;  %4687 = vmatpush3.msra.mxu0 %v2848_v45 }
0x150c   :  { %4696 = vmatprep.subr.mxu0 %v5134_v16 }
0x150d   :  { %v2759_v46 = vmul.f32 1.442695, %v2756_v49 }
0x150e   :  { %v2772_v51 = vpop.permute.xlu1 %2771 }
0x150f   :  { %4875 = vpow2.f32 %v2759_v46  ;;  %4682 = vmatpush3.msra.mxu1 %v2772_v51 }
0x1510   :  { %4691 = vmatprep.subr.mxu1 %v5134_v16 }
0x1512   :  { %v2926_v58 = vpop.permute.xlu1 %2925 }
0x1516   :  { %v3004_v62 = vpop.permute.xlu1 %3003 }
0x1518   :  { %v4874_v52 = vpop.eup %4873 }
0x1519   :  { %v2761_v54 = vsel %vm424_vm3, %v4874_v52, 0.0 }
0x151a   :  { %2762 = vadd.xlane.f32.xlu0 %v2761_v54  ;;  %v3002_v1 = vpop.permute.xlu1 %3001 }
0x151c   :  { %v4876_v55 = vpop.eup %4875 }
0x151d   :  { %v2764_v56 = vsel %vm424_vm3, %v4876_v55, 0.0 }
0x151e   :  { %2765 = vadd.xlane.f32.xlu0 %v2764_v56 }
0x1534   :  { %2923 = vrot.lane.b32.xlu0 %v5646_v53, %s5143_s2 }
0x15a3   :  { %v2763_v57 = vpop.xlane.xlu0 %2762 }
0x15a4   :  { %4877 = vrcp.f32 %v2763_v57 }
0x15a7   :  { %v2766_v24 = vpop.xlane.xlu0 %2765 }
0x15a8   :  { %4879 = vrcp.f32 %v2766_v24 }
0x15ab   :  { %v2924_v0 = vpop.permute.xlu0 %2923 }
0x15b1   :  { %v4878_v59 = vpop.eup %4877 }
0x15b2   :  { %v2768_v60 = vmul.f32 %v4878_v59, %v4874_v52 }
0x15b4   :  { %4684 = vmatmul.mubr.msk.f32.vlgmr.msra.gmra.mxu1 %vm424_vm3, %v2768_v60 }
0x15b5   :  { %v4880_v61 = vpop.eup %4879  ;;  %4692 = vmatpush3.xpose.msk.msra.mxu1 %vm424_vm3, %v2926_v58  ;;  %4693 = vmatprep.mubr.msk.f32.mxu1 %vm5135_vm2, %v5134_v16 }
0x15b6   :  { %v2770_v63 = vmul.f32 %v4880_v61, %v4876_v55  ;;  %4701 = vmatprep.subr.mxu1 %v5134_v16 }
0x15b8   :  { %4689 = vmatmul.mubr.msk.f32.vlgmr.msra.gmra.mxu0 %vm424_vm3, %v2770_v63  ;;  %4694 = vmatmul.mubr.msk.f32.vlgmr.msra.gmra.mxu1 %vm424_vm3, %v2924_v0 }
0x15b9   :  { %4697 = vmatpush3.xpose.msk.msra.mxu0 %vm424_vm3, %v3004_v62  ;;  %4698 = vmatprep.mubr.msk.f32.mxu0 %vm5135_vm2, %v5134_v16 }
0x15ba   :  { %4706 = vmatprep.subr.mxu0 %v5134_v16  ;;  %4703 = vmatprep.mubr.msk.f32.mxu1 %vm5135_vm2, %v5134_v16 }
0x15bc   :  { %4699 = vmatmul.mubr.msk.f32.vlgmr.msra.gmra.mxu0 %vm424_vm3, %v3002_v1 }
0x15bd   :  { %4708 = vmatprep.mubr.msk.f32.mxu0 %vm5135_vm2, %v5134_v16 }
0x1674   :  { %v5740_v2 = vpop.f32.mrf.mxu1 }
0x1676   :  { %v4685_v4 = vpop.f32.mrf.mxu1 }
0x1678   :  { %v5742_v6 = vpop.f32.mrf.mxu0  ;;  %v2997_v7 = vpop.f32.mrf.mxu1 }
0x1679   :  { %v3079_v8 = vmul.f32 0.35355338, %v2997_v7 }
0x167a   :  { %v4690_v9 = vpop.f32.mrf.mxu0  ;;  %v4695_v10 = vpop.f32.mrf.mxu1 }
0x167b   :  { %v3081_v11 = vadd.f32 %v3079_v8, %v5399_v33 }
0x167c   :  { %v3075_v12 = vpop.f32.mrf.mxu0 }
0x167d   :  { %v3080_v13 = vmul.f32 0.35355338, %v3075_v12  ;;  %v3083_v17 = vsel %vm424_vm3, %v3081_v11, -inf }
0x167e   :  { %3084 = vmax.xlane.f32.xlu0 %v3083_v17  ;;  %v4700_v18 = vpop.f32.mrf.mxu0  ;;  %v4333_v17 = vld [vmem:[%s5971_s3 + $0x30] sm:$0xff] }
0x167f   :  { %v3082_v3 = vadd.f32 %v3080_v13, %v5404_v41  ;;  %v4332_v18 = vld [vmem:[%s5971_s3 + $0x28] sm:$0xff] }
0x1681   :  { %v3086_v19 = vsel %vm424_vm3, %v3082_v3, -inf }
0x1682   :  { %3087 = vmax.xlane.f32.xlu1 %v3086_v19 }
0x1693   :  { %3105 = vrot.lane.b32.xlu1 %v5646_v53, %s5144_s29 }
0x1694   :  { %3181 = vrot.lane.b32.xlu0 %v5644_v48, %s5144_s29 }
0x1697   :  { %3259 = vrot.lane.b32.xlu1 %v5646_v53, %s5145_s11 }
0x169b   :  { %3337 = vrot.lane.b32.xlu1 %v5644_v48, %s5145_s11 }
0x169f   :  { %3335 = vrot.lane.b32.xlu1 %v5644_v48, %s5146_s0 }
0x1707   :  { %v3085_v20 = vpop.xlane.xlu0 %3084 }
0x1708   :  { %v3089_v21 = vsub.f32 %v3081_v11, %v3085_v20 }
0x170a   :  { %v3091_v22 = vmul.f32 1.442695, %v3089_v21 }
0x170b   :  { %v3182_v25 = vpop.permute.xlu0 %3181  ;;  %v3088_v26 = vpop.xlane.xlu1 %3087 }
0x170c   :  { %4881 = vpow2.f32 %v3091_v22  ;;  %v3090_v5 = vsub.f32 %v3082_v3, %v3088_v26  ;;  %4707 = vmatpush3.msra.mxu0 %v3182_v25  ;;  %v4331_v3 = vld [vmem:[%s5971_s3 + $0x20] sm:$0xff] }
0x170d   :  { %4716 = vmatprep.subr.mxu0 %v5134_v16 }
0x170e   :  { %v3093_v27 = vmul.f32 1.442695, %v3090_v5 }
0x170f   :  { %v3106_v29 = vpop.permute.xlu1 %3105 }
0x1710   :  { %4883 = vpow2.f32 %v3093_v27  ;;  %4702 = vmatpush3.msra.mxu1 %v3106_v29 }
0x1711   :  { %4711 = vmatprep.subr.mxu1 %v5134_v16 }
0x1713   :  { %v3260_v14 = vpop.permute.xlu1 %3259 }
0x1717   :  { %v3338_v40 = vpop.permute.xlu1 %3337 }
0x1719   :  { %v4882_v31 = vpop.eup %4881 }
0x171a   :  { %v3095_v32 = vsel %vm424_vm3, %v4882_v31, 0.0 }
0x171b   :  { %3096 = vadd.xlane.f32.xlu0 %v3095_v32  ;;  %v3336_v44 = vpop.permute.xlu1 %3335 }
0x171d   :  { %v4884_v34 = vpop.eup %4883 }
0x171e   :  { %v3098_v35 = vsel %vm424_vm3, %v4884_v34, 0.0 }
0x171f   :  { %3099 = vadd.xlane.f32.xlu0 %v3098_v35 }
0x1735   :  { %3257 = vrot.lane.b32.xlu0 %v5646_v53, %s5146_s0  ;;  %s5974_s0 = smov 24  }
0x17a4   :  { %v3097_v36 = vpop.xlane.xlu0 %3096 }
0x17a5   :  { %4885 = vrcp.f32 %v3097_v36 }
0x17a8   :  { %v3100_v15 = vpop.xlane.xlu0 %3099 }
0x17a9   :  { %4887 = vrcp.f32 %v3100_v15 }
0x17ac   :  { %v3258_v43 = vpop.permute.xlu0 %3257 }
0x17b2   :  { %v4886_v37 = vpop.eup %4885 }
0x17b3   :  { %v3102_v38 = vmul.f32 %v4886_v37, %v4882_v31  ;;  %v4335_v37 = vld [vmem:[#allocation7 + $0x1] ss:$0 sm:$0xff] }
0x17b5   :  { %4704 = vmatmul.mubr.msk.f32.vlgmr.msra.gmra.mxu1 %vm424_vm3, %v3102_v38 }
0x17b6   :  { %v4888_v39 = vpop.eup %4887  ;;  %4712 = vmatpush3.xpose.msk.msra.mxu1 %vm424_vm3, %v3260_v14  ;;  %4713 = vmatprep.mubr.msk.f32.mxu1 %vm5135_vm2, %v5134_v16 }
0x17b7   :  { %v3104_v42 = vmul.f32 %v4888_v39, %v4884_v34  ;;  %4721 = vmatprep.subr.mxu1 %v5134_v16 }
0x17b9   :  { %4709 = vmatmul.mubr.msk.f32.vlgmr.msra.gmra.mxu0 %vm424_vm3, %v3104_v42  ;;  %4714 = vmatmul.mubr.msk.f32.vlgmr.msra.gmra.mxu1 %vm424_vm3, %v3258_v43 }
0x17ba   :  { %4717 = vmatpush3.xpose.msk.msra.mxu0 %vm424_vm3, %v3338_v40  ;;  %4718 = vmatprep.mubr.msk.f32.mxu0 %vm5135_vm2, %v5134_v16 }
0x17bb   :  { %4726 = vmatprep.subr.mxu0 %v5134_v16  ;;  %4723 = vmatprep.mubr.msk.f32.mxu1 %vm5135_vm2, %v5134_v16 }
0x17bd   :  { %4719 = vmatmul.mubr.msk.f32.vlgmr.msra.gmra.mxu0 %vm424_vm3, %v3336_v44 }
0x17be   :  { %4728 = vmatprep.mubr.msk.f32.mxu0 %vm5135_vm2, %v5134_v16 }
0x1875   :  { %v3177_v45 = vpop.f32.mrf.mxu1 }
0x1877   :  { %v4705_v47 = vpop.f32.mrf.mxu1 }
0x1879   :  { %v3253_v49 = vpop.f32.mrf.mxu0  ;;  %v3331_v46 = vpop.f32.mrf.mxu1 }
0x187a   :  { %v3413_v51 = vmul.f32 0.35355338, %v3331_v46 }
0x187b   :  { %v4710_v52 = vpop.f32.mrf.mxu0  ;;  %v4715_v54 = vpop.f32.mrf.mxu1 }
0x187c   :  { %v3415_v55 = vadd.f32 %v3413_v51, %v5399_v33 }
0x187d   :  { %v3409_v56 = vpop.f32.mrf.mxu0 }
0x187e   :  { %v3414_v57 = vmul.f32 0.35355338, %v3409_v56  ;;  %v3417_v24 = vsel %vm424_vm3, %v3415_v55, -inf }
0x187f   :  { %3418 = vmax.xlane.f32.xlu0 %v3417_v24  ;;  %v4720_v58 = vpop.f32.mrf.mxu0  ;;  %v4341_v24 = vld [vmem:[%s5930_s12 + $0x28] sm:$0xff] }
0x1880   :  { %v3416_v59 = vadd.f32 %v3414_v57, %v5404_v41  ;;  %v4342_v57 = vld [vmem:[%s5930_s12 + $0x30] sm:$0xff]  ;;  %v4340_v58 = vld [vmem:[%s5930_s12 + $0x20] sm:$0xff] }
0x1882   :  { %v3420_v60 = vsel %vm424_vm3, %v3416_v59, -inf }
0x1883   :  { %3421 = vmax.xlane.f32.xlu1 %v3420_v60  ;;  %v4353_v60 = vld [vmem:[%s5932_s14 + $0x70] sm:$0xff] }
0x1894   :  { %3439 = vrot.lane.b32.xlu1 %v5646_v53, %s5147_s17 }
0x1898   :  { %3593 = vrot.lane.b32.xlu1 %v5740_v2, %s5972_s15 }
0x189c   :  { %3595 = vrot.lane.b32.xlu1 %v5742_v6, %s5972_s15 }
0x18a0   :  { %3603 = vrot.lane.b32.xlu1 %v3253_v49, %s5973_s7 }
0x1908   :  { %v3419_v33 = vpop.xlane.xlu0 %3418 }
0x1909   :  { %v3423_v61 = vsub.f32 %v3415_v55, %v3419_v33  ;;  %v4352_v33 = vld [vmem:[%s5932_s14 + $0x68] sm:$0xff] }
0x190b   :  { %v3425_v62 = vmul.f32 1.442695, %v3423_v61  ;;  %v4351_v61 = vld [vmem:[%s5932_s14 + $0x60] sm:$0xff] }
0x190c   :  { %v3422_v63 = vpop.xlane.xlu1 %3421 }
0x190d   :  { %4889 = vpow2.f32 %v3425_v62  ;;  %v3424_v41 = vsub.f32 %v3416_v59, %v3422_v63  ;;  %v4354_v59 = vld [vmem:[%s5932_s14 + $0x78] sm:$0xff] }
0x190f   :  { %v3427_v0 = vmul.f32 1.442695, %v3424_v41 }
0x1910   :  { %v3440_v1 = vpop.permute.xlu1 %3439 }
0x1911   :  { %4891 = vpow2.f32 %v3427_v0  ;;  %4722 = vmatpush3.msra.mxu1 %v3440_v1 }
0x1914   :  { %v3594_v25 = vpop.permute.xlu1 %3593 }
0x1915   :  { %v3615_v27 = vsel %vm424_vm3, %v5700_v28, %v3594_v25 }
0x1918   :  { %v3596_v26 = vpop.permute.xlu1 %3595 }
0x1919   :  { %v3616_v35 = vsel %vm424_vm3, %v5702_v30, %v3596_v26 }
0x191a   :  { %v4890_v4 = vpop.eup %4889 }
0x191b   :  { %v3429_v53 = vsel %vm424_vm3, %v4890_v4, 0.0 }
0x191c   :  { %3430 = vadd.xlane.f32.xlu0 %v3429_v53  ;;  %v3604_v29 = vpop.permute.xlu1 %3603 }
0x191d   :  { %v3618_v36 = vsel %vm211_vm0, %v3616_v35, %v3604_v29 }
0x191e   :  { %v4892_v2 = vpop.eup %4891 }
0x191f   :  { %v3432_v7 = vsel %vm424_vm3, %v4892_v2, 0.0 }
0x1920   :  { %3433 = vadd.xlane.f32.xlu0 %v3432_v7 }
0x1936   :  { %3515 = vrot.lane.b32.xlu0 %v5644_v48, %s5147_s17  ;;  %v4334_v48 = vld [vmem:[%s5971_s3 + $0x38] sm:$0xff] }
0x1937   :  { %4731 = vmatprep.subr.mxu1 %v4334_v48 }
0x193a   :  { %3601 = vrot.lane.b32.xlu0 %v3177_v45, %s5973_s7 }
0x19a5   :  { %v3431_v6 = vpop.xlane.xlu0 %3430 }
0x19a6   :  { %4893 = vrcp.f32 %v3431_v6  ;;  %v4339_v6 = vld [vmem:[#allocation10 + $0x1] ss:$0 sm:$0xff] }
0x19a9   :  { %v3434_v8 = vpop.xlane.xlu0 %3433 }
0x19aa   :  { %4895 = vrcp.f32 %v3434_v8 }
0x19ad   :  { %v3516_v9 = vpop.permute.xlu0 %3515 }
0x19ae   :  { %4727 = vmatpush3.msra.mxu0 %v3516_v9 }
0x19b1   :  { %v3602_v5 = vpop.permute.xlu0 %3601 }
0x19b2   :  { %v3617_v31 = vsel %vm211_vm0, %v3615_v27, %v3602_v5  ;;  %v4355_v27 = vld [vmem:[#allocation13 + $0x1] ss:$0 sm:$0xff] }
0x19b3   :  { %v4894_v10 = vpop.eup %4893 }
0x19b4   :  { %v3436_v11 = vmul.f32 %v4894_v10, %v4890_v4 }
0x19b6   :  { %4724 = vmatmul.mubr.msk.f32.vlgmr.msra.gmra.mxu1 %vm424_vm3, %v3436_v11 }
0x19b7   :  { %v4896_v12 = vpop.eup %4895  ;;  %4732 = vmatpush3.msra.mxu1 %v4334_v48  ;;  %v4350_v48 = vld [vmem:[%s5932_s14 + $0x58] sm:$0xff] }
0x19b8   :  { %v3438_v13 = vmul.f32 %v4896_v12, %v4892_v2  ;;  %4733 = vmatprep.subr.mxu1 %v4333_v17  ;;  %v4338_v2 = vld [vmem:[#allocation8 + $0x1] ss:$0 sm:$0xff] }
0x19b9   :  { %4734 = vmatpush3.msra.mxu1 %v4333_v17  ;;  %v4349_v17 = vld [vmem:[%s5932_s14 + $0x50] sm:$0xff] }
0x19ba   :  { %4729 = vmatmul.mubr.msk.f32.vlgmr.msra.gmra.mxu0 %vm424_vm3, %v3438_v13  ;;  %4735 = vmatprep.subr.mxu1 %v4332_v18 }
0x19bb   :  { %4736 = vmatpush3.msra.mxu1 %v4332_v18  ;;  %v4348_v18 = vld [vmem:[%s5932_s14 + $0x48] sm:$0xff] }
0x19bc   :  { %4737 = vmatprep.subr.mxu1 %v4331_v3 }
0x19bd   :  { %4738 = vmatpush3.msra.mxu1 %v4331_v3  ;;  %v4347_v3 = vld [vmem:[%s5932_s14 + $0x40] sm:$0xff] }
0x19be   :  { %4753 = vmatprep.subr.mxu1 %v4354_v59 }
0x1a76   :  { %v3511_v19 = vpop.f32.mrf.mxu1 }
0x1a77   :  { %3609 = vrot.lane.b32.xlu0 %v3511_v19, %s5974_s0  ;;  %v4344_v19 = vld [vmem:[#allocation11 + $0x1] ss:$0 sm:$0xff] }
0x1a78   :  { %v4725_v20 = vpop.f32.mrf.mxu1 }
0x1a7a   :  { %v3587_v21 = vpop.f32.mrf.mxu0 }
0x1a7b   :  { %3611 = vrot.lane.b32.xlu1 %v3587_v21, %s5974_s0 }
0x1a7c   :  { %v4730_v22 = vpop.f32.mrf.mxu0 }
0x1ae9   :  { %v3610_v32 = vpop.permute.xlu0 %3609 }
0x1aea   :  { %v3619_v34 = vsel %vm1784_vm6, %v3617_v31, %v3610_v32 }
0x1aeb   :  { %4739 = vmatprep.mubr.msk.f32.mxu1 %vm339_vm1, %v3619_v34 }
0x1aed   :  { %v3612_v15 = vpop.permute.xlu1 %3611 }
0x1aee   :  { %v3620_v14 = vsel %vm1784_vm6, %v3618_v36, %v3612_v15 }
0x1aef   :  { %4740 = vmatmul.mubr.msk.f32.vlgmr.msra.gmra.mxu1 %vm339_vm1, %v3620_v14 }
0x1af0   :  { %4754 = vmatpush3.msra.mxu1 %v4354_v59 }
0x1af1   :  { %4755 = vmatprep.subr.mxu1 %v4353_v60 }
0x1af2   :  { %4756 = vmatpush3.msra.mxu1 %v4353_v60  ;;  %v4360_v60 = vld [vmem:[#allocation14 + $0x1] ss:$0 sm:$0xff] }
0x1af3   :  { %4757 = vmatprep.subr.mxu1 %v4352_v33 }
0x1af4   :  { %4758 = vmatpush3.msra.mxu1 %v4352_v33 }
0x1af5   :  { %4759 = vmatprep.subr.mxu1 %v4351_v61 }
0x1af6   :  { %4760 = vmatpush3.msra.mxu1 %v4351_v61 }
0x1af7   :  { %4761 = vmatprep.subr.mxu1 %v4350_v48 }
0x1af8   :  { %4762 = vmatpush3.msra.mxu1 %v4350_v48 }
0x1af9   :  { %4763 = vmatprep.subr.mxu1 %v4349_v17 }
0x1afa   :  { %4764 = vmatpush3.msra.mxu1 %v4349_v17 }
0x1afb   :  { %4765 = vmatprep.subr.mxu1 %v4348_v18 }
0x1afc   :  { %4766 = vmatpush3.msra.mxu1 %v4348_v18 }
0x1afd   :  { %4767 = vmatprep.subr.mxu1 %v4347_v3 }
0x1afe   :  { %4768 = vmatpush3.msra.mxu1 %v4347_v3 }
0x1baf   :  { %v4741_v28 = vpop.f32.mrf.mxu1 }
0x1bb0   :  { %v3712_v38 = vadd.f32 %v4741_v28, %v4335_v37 }
0x1bb1   :  { %v3706_v39 = vpop.f32.mrf.mxu1 }
0x1bb2   :  { %v3716_v40 = vadd.f32 %v3712_v38, %v5633_v23  ;;  %v3707_v42 = vadd.f32 %v4335_v37, %v3706_v39 }
0x1bb4   :  { %v3715_v43 = vadd.f32 %v3707_v42, %v5631_v50  ;;  %v3724_v44 = vsel %vm339_vm1, %v3716_v40, 0.0  ;;  %v4343_v50 = vld [vmem:[%s5930_s12 + $0x38] sm:$0xff] }
0x1bb5   :  { %3725 = vadd.xlane.f32.xlu1 %v3724_v44  ;;  %4742 = vmatprep.subr.mxu0 %v4343_v50 }
0x1bb6   :  { %v3721_v30 = vsel %vm339_vm1, %v3715_v43, 0.0  ;;  %4743 = vmatpush3.msra.mxu0 %v4343_v50 }
0x1bb7   :  { %3722 = vadd.xlane.f32.xlu0 %v3721_v30  ;;  %4744 = vmatprep.subr.mxu0 %v4342_v57 }
0x1bb8   :  { %4745 = vmatpush3.msra.mxu0 %v4342_v57 }
0x1bb9   :  { %4746 = vmatprep.subr.mxu0 %v4341_v24 }
0x1bba   :  { %4747 = vmatpush3.msra.mxu0 %v4341_v24  ;;  %v4359_v24 = vld [vmem:[%s5934_s16 + $0x1] ss:$0 sm:$0xff] }
0x1bbb   :  { %4748 = vmatprep.subr.mxu0 %v4340_v58 }
0x1bbc   :  { %4749 = vmatpush3.msra.mxu0 %v4340_v58 }
0x1bbd   :  { %4772 = vmatprep.subr.mxu0 %v5134_v16 }
0x1c3e   :  { %v3726_v45 = vpop.xlane.xlu1 %3725 }
0x1c3f   :  { %v3728_v47 = vmul.f32 0.03125, %v3726_v45 }
0x1c40   :  { %v3723_v49 = vpop.xlane.xlu0 %3722 }
0x1c41   :  { %v3727_v46 = vmul.f32 0.03125, %v3723_v49  ;;  %v3730_v51 = vsub.f32 %v3716_v40, %v3728_v47  ;;  %v4025_v47 = vld [vmem:[#allocation16 + $0x18] sm:$0xff]  ;;  %v4024_v49 = vld [vmem:[#allocation16 + $0x10] sm:$0xff] }
0x1c43   :  { %v3729_v52 = vsub.f32 %v3715_v43, %v3727_v46  ;;  %v3732_v56 = vmul.f32 %v3730_v51, %v3730_v51  ;;  %v4023_v46 = vld [vmem:[#allocation16 + $0x8] sm:$0xff] }
0x1c45   :  { %v3731_v54 = vmul.f32 %v3729_v52, %v3729_v52  ;;  %v3736_v23 = vsel %vm339_vm1, %v3732_v56, 0.0 }
0x1c47   :  { %v3733_v55 = vsel %vm339_vm1, %v3731_v54, 0.0 }
0x1c48   :  { %3734 = vadd.xlane.f32.xlu0 %v3733_v55 }
0x1c4c   :  { %3737 = vadd.xlane.f32.xlu0 %v3736_v23 }
0x1cd1   :  { %v3735_v62 = vpop.xlane.xlu0 %3734 }
0x1cd2   :  { %v3739_v63 = vmul.f32 0.03125, %v3735_v62 }
0x1cd4   :  { %v3741_v41 = vadd.f32 1e-05, %v3739_v63 }
0x1cd5   :  { %v3738_v0 = vpop.xlane.xlu0 %3737 }
0x1cd6   :  { %4897 = vrsqrt.f32 %v3741_v41  ;;  %v3740_v1 = vmul.f32 0.03125, %v3738_v0 }
0x1cd8   :  { %v3742_v4 = vadd.f32 1e-05, %v3740_v1 }
0x1cda   :  { %4899 = vrsqrt.f32 %v3742_v4 }
0x1ce3   :  { %v4898_v53 = vpop.eup %4897 }
0x1ce4   :  { %v3745_v7 = vmul.f32 %v4898_v53, %v3729_v52 }
0x1ce6   :  { %v3753_v8 = vmul.f32 %v4338_v2, %v3745_v7 }
0x1ce7   :  { %v4900_v9 = vpop.eup %4899 }
0x1ce8   :  { %v3746_v10 = vmul.f32 %v4900_v9, %v3730_v51  ;;  %v3761_v11 = vadd.f32 %v4339_v6, %v3753_v8  ;;  %v4022_v51 = vld [vmem:[#allocation16] sm:$0xff] }
0x1cea   :  { %v3754_v12 = vmul.f32 %v4338_v2, %v3746_v10  ;;  %4750 = vmatprep.mubr.msk.f32.mxu0 %vm339_vm1, %v3761_v11 }
0x1cec   :  { %v3762_v13 = vadd.f32 %v4339_v6, %v3754_v12 }
0x1cee   :  { %4751 = vmatmul.mubr.msk.f32.vlgmr.msra.gmra.mxu0 %vm339_vm1, %v3762_v13 }
0x1cef   :  { %4780 = vmatprep.mubr.msk.f32.mxu0 %vm5135_vm2, %v5134_v16  ;;  %4773 = vmatpush3.msra.mxu0 %v4025_v47 }
0x1cf0   :  { %4774 = vmatprep.subr.mxu0 %v5134_v16 }
0x1cf1   :  { %4775 = vmatpush3.msra.mxu0 %v4024_v49  ;;  %v4363_v49 = vld [vmem:[%s5938_s20] ss:$0 sm:$0xff]  ;;  %s5089_s20 = scalar_lea.vmem %s4242_s27, 32 }
0x1cf2   :  { %4776 = vmatprep.subr.mxu0 %v5134_v16  ;;  %p5090_p3 = scmp.ne.s32.totalorder %s4242_s27, %s5089_s20  ;;  %p5095_p5 = scmp.lt.s32.totalorder %s5089_s20, %s5089_s20 }
0x1cf3   :  { %4777 = vmatpush3.msra.mxu0 %v4023_v46 }
0x1cf4   :  { %4778 = vmatprep.subr.mxu0 %v5134_v16  ;;  %p5096_p6 = por %p5095_p5, %p5094_p4 }
0x1cf5   :  { %4779 = vmatpush3.msra.mxu0 %v4022_v51  ;;  %v4364_v51 = vld [vmem:[%s5939_s21] ss:$0 sm:$0xff] }
0x1cf6   :  { %4783 = vmatprep.subr.mxu0 %v5134_v16  ;;  %p5097_p7 = pnand %p5096_p6, %p5090_p3 }
0x1dae   :  { %v4752_v20 = vpop.f32.mrf.mxu0 }
0x1daf   :  { %v3854_v21 = vadd.f32 %v4752_v20, %v4344_v19  ;;  %v4151_v20 = vld [vmem:[%s5940_s22 + $0x10] sm:$0xff] }
0x1db0   :  { %v3848_v22 = vpop.f32.mrf.mxu0 }
0x1db1   :  { %v3849_v25 = vadd.f32 %v4344_v19, %v3848_v22  ;;  %v3858_v5 = vmax.f32 %v3854_v21, 0.0  ;;  %v4152_v19 = vld [vmem:[%s5940_s22 + $0x18] sm:$0xff]  ;;  %v4150_v21 = vld [vmem:[%s5940_s22 + $0x8] sm:$0xff]  ;;  %v4149_v22 = vld [vmem:[%s5940_s22] sm:$0xff] }
0x1db3   :  { %v3857_v26 = vmax.f32 %v3849_v25, 0.0  ;;  %v4361_v25 = vld [vmem:[%s5937_s19] ss:$0 sm:$0xff] }
0x1db5   :  { %4769 = vmatprep.mubr.msk.f32.mxu1 %vm2035_vm7, %v3857_v26 }
0x1db6   :  { %4770 = vmatmul.mubr.msk.f32.vlgmr.msra.gmra.mxu1 %vm2035_vm7, %v3858_v5 }
0x1e76   :  { %v4771_v29 = vpop.f32.mrf.mxu1 }
0x1e77   :  { %v3954_v31 = vadd.f32 %v4771_v29, %v4355_v27 }
0x1e78   :  { %v3948_v32 = vpop.f32.mrf.mxu1 }
0x1e79   :  { %v3958_v34 = vadd.f32 %v3954_v31, %v3762_v13  ;;  %v3949_v35 = vadd.f32 %v4355_v27, %v3948_v32 }
0x1e7b   :  { %v3957_v36 = vadd.f32 %v3949_v35, %v3761_v11  ;;  %v3966_v15 = vsel %vm339_vm1, %v3958_v34, 0.0 }
0x1e7c   :  { %3967 = vadd.xlane.f32.xlu0 %v3966_v15 }
0x1e7d   :  { %v3963_v14 = vsel %vm339_vm1, %v3957_v36, 0.0 }
0x1e7e   :  { %3964 = vadd.xlane.f32.xlu1 %v3963_v14 }
0x1f05   :  { %v3968_v37 = vpop.xlane.xlu0 %3967 }
0x1f06   :  { %v3970_v28 = vmul.f32 0.03125, %v3968_v37 }
0x1f07   :  { %v3965_v38 = vpop.xlane.xlu1 %3964 }
0x1f08   :  { %v3972_v39 = vsub.f32 %v3958_v34, %v3970_v28  ;;  %v3969_v40 = vmul.f32 0.03125, %v3965_v38 }
0x1f0a   :  { %v3971_v42 = vsub.f32 %v3957_v36, %v3969_v40  ;;  %v3974_v43 = vmul.f32 %v3972_v39, %v3972_v39 }
0x1f0c   :  { %v3978_v44 = vsel %vm339_vm1, %v3974_v43, 0.0  ;;  %v3973_v30 = vmul.f32 %v3971_v42, %v3971_v42 }
0x1f0d   :  { %3979 = vadd.xlane.f32.xlu0 %v3978_v44 }
0x1f0e   :  { %v3975_v45 = vsel %vm339_vm1, %v3973_v30, 0.0 }
0x1f0f   :  { %3976 = vadd.xlane.f32.xlu1 %v3975_v45 }
0x1f96   :  { %v3980_v52 = vpop.xlane.xlu0 %3979 }
0x1f97   :  { %v3982_v54 = vmul.f32 0.03125, %v3980_v52 }
0x1f98   :  { %v3977_v55 = vpop.xlane.xlu1 %3976 }
0x1f99   :  { %v3984_v56 = vadd.f32 1e-05, %v3982_v54  ;;  %v3981_v23 = vmul.f32 0.03125, %v3977_v55 }
0x1f9b   :  { %4901 = vrsqrt.f32 %v3984_v56  ;;  %v3983_v50 = vadd.f32 1e-05, %v3981_v23  ;;  %v4365_v56 = vld [vmem:[%s5941_s23] ss:$0 sm:$0xff] }
0x1f9d   :  { %4903 = vrsqrt.f32 %v3983_v50 }
0x1fa8   :  { %v4902_v57 = vpop.eup %4901 }
0x1fa9   :  { %v3988_v58 = vmul.f32 %v4902_v57, %v3972_v39 }
0x1faa   :  { %v4904_v59 = vpop.eup %4903 }
0x1fab   :  { %v3996_v33 = vmul.f32 %v4359_v24, %v3988_v58  ;;  %v3987_v61 = vmul.f32 %v4904_v59, %v3971_v42 }
0x1fad   :  { %v3995_v62 = vmul.f32 %v4359_v24, %v3987_v61  ;;  %v4004_v63 = vadd.f32 %v4360_v60, %v3996_v33 }
0x1faf   :  { %v4003_v41 = vadd.f32 %v4360_v60, %v3995_v62  ;;  %v4012_v0 = vsel %vm339_vm1, %v4004_v63, 0.0 }
0x1fb0   :  { %v4013_v1 = vrot.slane %v4012_v0, 4 }
0x1fb1   :  { %v4005_v4 = vsel %vm339_vm1, %v4003_v41, 0.0 }
0x1fb2   :  { %v4006_v53 = vrot.slane %v4005_v4, 4  ;;  %v4014_v2 = vadd.f32 %v4013_v1, %v4012_v0 }
0x1fb4   :  { %v4007_v7 = vadd.f32 %v4006_v53, %v4005_v4  ;;  %v4015_v6 = vrot.slane %v4014_v2, 2 }
0x1fb6   :  { %v4008_v8 = vrot.slane %v4007_v7, 2  ;;  %v4016_v9 = vadd.f32 %v4015_v6, %v4014_v2 }
0x1fb8   :  { %v4009_v10 = vadd.f32 %v4008_v8, %v4007_v7  ;;  %v4017_v11 = vrot.slane %v4016_v9, 1 }
0x1fba   :  { %v4010_v12 = vrot.slane %v4009_v10, 1  ;;  %v4018_v13 = vadd.f32 %v4017_v11, %v4016_v9 }
0x1fbc   :  { %v4011_v48 = vadd.f32 %v4010_v12, %v4009_v10  ;;  %v4021_v18 = vmul.f32 0.125, %v4018_v13 }
0x1fbe   :  { %v4020_v17 = vmul.f32 0.125, %v4011_v48 }
0x1fc0   :  { %v4036_v3 = vsel %vm4035_vm8, %v4021_v18, %v4020_v17 }
0x1fc1   :  { %4781 = vmatmul.mubr.msk.f32.vlgmr.msra.gmra.mxu0 %vm339_vm1, %v4036_v3 }
0x1fc2   :  { %4791 = vmatprep.mubr.msk.f32.mxu0 %vm5135_vm2, %v5134_v16  ;;  %4784 = vmatpush3.msra.mxu0 %v4152_v19 }
0x1fc3   :  { %4785 = vmatprep.subr.mxu0 %v5134_v16 }
0x1fc4   :  { %4786 = vmatpush3.msra.mxu0 %v4151_v20 }
0x1fc5   :  { %4787 = vmatprep.subr.mxu0 %v5134_v16 }
0x1fc6   :  { %4788 = vmatpush3.msra.mxu0 %v4150_v21 }
0x1fc7   :  { %4789 = vmatprep.subr.mxu0 %v5134_v16 }
0x1fc8   :  { %4790 = vmatpush3.msra.mxu0 %v4149_v22 }
0x2081   :  { %v4105_v26 = vpop.f32.mrf.mxu0 }
0x2082   :  { %v4106_v5 = vadd.f32 %v4361_v25, %v4105_v26 }
0x2083   :  { %v4782_v27 = vpop.f32.mrf.mxu0 }
0x2084   :  { %v4110_v29 = vsel %vm4109_vm9, %v4106_v5, 0.0 }
0x2085   :  { %v4111_v31 = vrot.slane %v4110_v29, 4 }
0x2087   :  { %v4112_v32 = vadd.f32 %v4111_v31, %v4110_v29 }
0x2089   :  { %v4113_v34 = vrot.slane %v4112_v32, 2 }
0x208b   :  { %v4114_v35 = vadd.f32 %v4113_v34, %v4112_v32 }
0x208d   :  { %v4115_v36 = vrot.slane %v4114_v35, 1 }
0x208f   :  { %v4116_v15 = vadd.f32 %v4115_v36, %v4114_v35 }
0x2091   :  { %v4118_v14 = vmul.f32 0.5, %v4116_v15 }
0x2093   :  { %v4119_v37 = vsub.f32 %v4106_v5, %v4118_v14 }
0x2095   :  { %v4120_v28 = vmul.f32 %v4119_v37, %v4119_v37 }
0x2097   :  { %v4121_v16 = vsel %vm4109_vm9, %v4120_v28, 0.0 }
0x2098   :  { %v4122_v38 = vrot.slane %v4121_v16, 4 }
0x209a   :  { %v4123_v39 = vadd.f32 %v4122_v38, %v4121_v16 }
0x209c   :  { %v4124_v40 = vrot.slane %v4123_v39, 2 }
0x209e   :  { %v4125_v42 = vadd.f32 %v4124_v40, %v4123_v39 }
0x20a0   :  { %v4126_v43 = vrot.slane %v4125_v42, 1 }
0x20a2   :  { %v4127_v44 = vadd.f32 %v4126_v43, %v4125_v42 }
0x20a4   :  { %v4128_v30 = vmul.f32 0.5, %v4127_v44 }
0x20a6   :  { %v4129_v45 = vadd.f32 1e-05, %v4128_v30 }
0x20a8   :  { %4905 = vrsqrt.f32 %v4129_v45 }
0x20b5   :  { %v4906_v47 = vpop.eup %4905 }
0x20b6   :  { %v4131_v46 = vmul.f32 %v4906_v47, %v4119_v37 }
0x20b8   :  { %v4139_v52 = vmul.f32 %v4363_v49, %v4131_v46 }
0x20ba   :  { %v4147_v54 = vadd.f32 %v4364_v51, %v4139_v52 }
0x20bc   :  { %4907 = vtanh.f32 %v4147_v54 }
0x20c9   :  { %v4908_v55 = vpop.eup %4907 }
0x20ca   :  { %4792 = vmatmul.mubr.msk.f32.vlgmr.msra.gmra.mxu0 %vm339_vm1, %v4908_v55 }
0x218a   :  { %v4229_v23 = vpop.f32.mrf.mxu0 }
0x218b   :  { %v4230_v50 = vadd.f32 %v4365_v56, %v4229_v23 }
0x218c   :  { %v4793_v57 = vpop.f32.mrf.mxu0 }
0x218d   :  { %4234 = vst.msk [vmem:[#allocation17] sm:$0x3] %vm4233_vm10, %v4230_v50 }
0x218e   :  { %5100 = shalt.err (!%p5097_p7)
}
0x218f   :  { %4244 = dma.vmem_to_hbm [thread:$0]  %s4242_s27, 32, %s5942_s24, [#allocation4]  }
0x2190   :  { %5119 = dma.done.wait [#allocation4], 32  }
0x2191   :  { %5120 = vsyncadd [#allocation4], 4294967264 }
0x2192   :  { %4248 = vsyncpa [#allocation3], 1 }
0x2193   :  { %4249 = vsyncpa [#allocation6], 1 }
0x2194   :  { %4250 = vsyncpa [#allocation9], 1 }
0x2195   :  { %4251 = vsyncpa [#allocation12], 1 }
0x2196   :  { %4252 = vsyncpa [#allocation15], 1 }
0x2197   :  { %4253 = vsyncpa [#allocation4], 1 }

</bundles_post_ra>
